<compile_context>
chip_gen: v6e
topology: v6e:2x2x1
jax: 0.10.0
libtpu: 0.0.40
codegen_flags: <defaults>
</compile_context>

<pallas_src>
import functools

import jax
import jax.numpy as jnp
from jax.experimental import pallas as pl
from jax.experimental.pallas import tpu as pltpu


# ----------------------------------------------------------------------------
# Fused kernel: one grid step per batch element (grid axis is "arbitrary"
# because BN statistics accumulate across it).
# ----------------------------------------------------------------------------
def _fused_kernel(x_ref, w_ref, gb_ref, gamma_ref, beta_ref, o_ref,
                  sum_ref, sq_ref, *, N, H, W, Cin, Cout, K, Ho, Wo, r, eps):
    n = pl.program_id(0)

    @pl.when(n == 0)
    def _init():
        sum_ref[...] = jnp.zeros_like(sum_ref)
        sq_ref[...] = jnp.zeros_like(sq_ref)

    # ---- zero padding (padding=1) folded into the kernel --------------------
    x = x_ref[0]                                             # (H, W*Cin)
    zrow = jnp.zeros((1, W * Cin), jnp.float32)
    zcol = jnp.zeros((H + 2, Cin), jnp.float32)
    xp = jnp.concatenate([zrow, x, zrow], axis=0)            # (H+2, W*Cin)
    xp = jnp.concatenate([zcol, xp, zcol], axis=1)           # (H+2, (W+2)*Cin)

    # ---- conv as ONE matmul --------------------------------------------------
    # patch slab column order: (kh, kw) major, then wo, then ci (matches w_ref rows)
    slabs = [xp[kh:kh + Ho, kw * Cin:kw * Cin + Wo * Cin]
             for kh in range(K) for kw in range(K)]
    patches = jnp.concatenate(slabs, axis=1)                 # (Ho, K*K*Wo*Cin)
    acc = jnp.dot(patches.astype(jnp.bfloat16), w_ref[...],
                  preferred_element_type=jnp.float32)        # (Ho, Wo*Cout) f32

    # stage the raw conv output in the VMEM-resident output block (lane-dense);
    # it is normalized in place on the last grid step.
    o_ref[n] = acc

    # ---- BN statistics (pre-shuffle layout, lane-dense) ---------------------
    sum_ref[...] += jnp.sum(acc, axis=0, keepdims=True)      # (1, Wo*Cout)
    sq_ref[...] += jnp.sum(acc * acc, axis=0, keepdims=True)

    # ---- finalize: batch stats -> per-lane scale/shift, normalize + ReLU ----
    @pl.when(n == pl.num_programs(0) - 1)
    def _finalize():
        stats = jnp.concatenate([sum_ref[...], sq_ref[...]], axis=0)   # (2, Wo*Cout)
        # Sum over wo and over the r*r conv channels of each BN channel, and
        # broadcast back to the (1, Wo*Cout) lane layout -- one tiny exact matmul.
        grouped = jnp.dot(stats, gb_ref[...],
                          preferred_element_type=jnp.float32,
                          precision=jax.lax.Precision.HIGHEST)         # (2, Wo*Cout)
        inv_cnt = 1.0 / float(N * Ho * Wo * r * r)
        mean = grouped[0:1, :] * inv_cnt
        var = grouped[1:2, :] * inv_cnt - mean * mean        # biased var (torch train BN)
        scale = gamma_ref[...] * jax.lax.rsqrt(var + eps)
        shift = beta_ref[...] - mean * scale
        for i in range(N):                                   # N is small & static
            o_ref[i] = jnp.maximum(o_ref[i] * scale + shift, 0.0)


# ----------------------------------------------------------------------------
# Wrapper: NCHW in / NCHW out (matches the PyTorch module exactly).
# ----------------------------------------------------------------------------
def subpixel_block_forward(x_nchw, conv_w_oihw, gamma, beta, *, eps=1e-5):
    N, Cin, H, W = x_nchw.shape
    Cout, Cin_w, K, K2 = conv_w_oihw.shape
    assert Cin_w == Cin and K2 == K
    r = 2
    C = Cout // (r * r)
    assert C * r * r == Cout and C == Cin, \
        "PixelShuffle(2) + BatchNorm2d(in_chanel) requires out_chanel == 4*in_chanel"
    # stride=1, padding=1 (the shape-consistent configuration of this module).
    Ho = H + 2 - K + 1
    Wo = W + 2 - K + 1

    # ---- small constant operands built wrapper-side -------------------------
    # input as (N, H, W*Cin): free row-major reshape of NHWC, lane dim = W*Cin
    x2 = jnp.transpose(x_nchw, (0, 2, 3, 1)).reshape(N, H, W * Cin)

    # block-diagonal conv weight: rows (tap, wo, ci), cols (wo', co)
    w_hwio = jnp.transpose(conv_w_oihw, (2, 3, 1, 0)).astype(jnp.float32)   # (K,K,Cin,Cout)
    w_taps = w_hwio.reshape(K * K, Cin, Cout)                               # (K*K,Cin,Cout)
    eye = jnp.eye(Wo, dtype=jnp.float32)
    wbd = (w_taps[:, None, :, None, :] * eye[None, :, None, :, None])       # (K*K,Wo,Cin,Wo,Cout)
    wbd = wbd.reshape(K * K * Wo * Cin, Wo * Cout).astype(jnp.bfloat16)

    # grouping matrix: lane L belongs to BN channel (L % Cout) // (r*r)
    lane_grp = (jnp.arange(Wo * Cout) % Cout) // (r * r)
    gb = (lane_grp[:, None] == lane_grp[None, :]).astype(jnp.float32)       # (Wo*Cout, Wo*Cout)

    gamma_lane = jnp.tile(jnp.repeat(gamma.astype(jnp.float32), r * r), Wo).reshape(1, Wo * Cout)
    beta_lane = jnp.tile(jnp.repeat(beta.astype(jnp.float32), r * r), Wo).reshape(1, Wo * Cout)

    kernel = functools.partial(_fused_kernel, N=N, H=H, W=W, Cin=Cin, Cout=Cout,
                               K=K, Ho=Ho, Wo=Wo, r=r, eps=eps)

    y = pl.pallas_call(
        kernel,
        out_shape=jax.ShapeDtypeStruct((N, Ho, Wo * Cout), jnp.float32),
        grid_spec=pltpu.PrefetchScalarGridSpec(
            num_scalar_prefetch=0,
            grid=(N,),
            in_specs=[
                pl.BlockSpec((1, H, W * Cin), lambda n: (n, 0, 0)),
                pl.BlockSpec((K * K * Wo * Cin, Wo * Cout), lambda n: (0, 0)),
                pl.BlockSpec((Wo * Cout, Wo * Cout), lambda n: (0, 0)),
                pl.BlockSpec((1, Wo * Cout), lambda n: (0, 0)),
                pl.BlockSpec((1, Wo * Cout), lambda n: (0, 0)),
            ],
            out_specs=pl.BlockSpec((N, Ho, Wo * Cout), lambda n: (0, 0, 0)),
            scratch_shapes=[
                pltpu.VMEM((1, Wo * Cout), jnp.float32),   # running sum per lane
                pltpu.VMEM((1, Wo * Cout), jnp.float32),   # running sum of squares
            ],
        ),
        # BN statistics accumulate across the batch grid axis -> must be "arbitrary"
        compiler_params=pltpu.CompilerParams(dimension_semantics=("arbitrary",)),
    )(x2, wbd, gb, gamma_lane, beta_lane)

    # PixelShuffle is a pure permutation: fold it into the single layout transform
    # (NHWC-ish -> NCHW) the wrapper has to do anyway on the small final output.
    o = y.reshape(N, Ho, Wo, C, r, r)
    o = jnp.transpose(o, (0, 3, 1, 4, 2, 5)).reshape(N, C, Ho * r, Wo * r)
    return o


# ----------------------------------------------------------------------------
# Pure-JAX reference (NCHW, mirrors the PyTorch forward).
# ----------------------------------------------------------------------------
def reference(x_nchw, w_oihw, gamma, beta, *, eps=1e-5, operand_dtype=jnp.float32):
    o = jax.lax.conv_general_dilated(
        x_nchw.astype(operand_dtype), w_oihw.astype(operand_dtype),
        window_strides=(1, 1), padding=((1, 1), (1, 1)),
        dimension_numbers=("NCHW", "OIHW", "NCHW"),
        preferred_element_type=jnp.float32,
        precision=jax.lax.Precision.HIGHEST)
    N, Crr, H, W = o.shape
    r = 2
    C = Crr // (r * r)
    o = o.reshape(N, C, r, r, H, W)
    o = jnp.transpose(o, (0, 1, 4, 2, 5, 3)).reshape(N, C, H * r, W * r)
    mean = o.mean(axis=(0, 2, 3), keepdims=True)
    var = ((o - mean) ** 2).mean(axis=(0, 2, 3), keepdims=True)   # biased (train-mode BN)
    o = (o - mean) * jax.lax.rsqrt(var + eps) * gamma.reshape(1, C, 1, 1) \
        + beta.reshape(1, C, 1, 1)
    return jnp.maximum(o, 0.0)


if __name__ == "__main__":
    key = jax.random.PRNGKey(0)
    k1, k2, k3, k4 = jax.random.split(key, 4)

    # subpixel_block(in_chanel=4, kernel_size=3, out_chanel=16, stride=1)
    N, Cin, H, W = 2, 4, 16, 16
    K = 3
    Cout = 4 * Cin

    x = jax.random.normal(k1, (N, Cin, H, W), jnp.float32)
    conv_w = 0.1 * jax.random.normal(k2, (Cout, Cin, K, K), jnp.float32)   # OIHW
    gamma = 1.0 + 0.1 * jax.random.normal(k3, (Cin,), jnp.float32)
    beta = 0.1 * jax.random.normal(k4, (Cin,), jnp.float32)

    fwd = jax.jit(subpixel_block_forward)
    out = jax.block_until_ready(fwd(x, conv_w, gamma, beta))
    assert out.shape == (N, Cin, 2 * H, 2 * W), out.shape

    # Loose check vs full-f32 reference: kernel uses bf16 MXU operands (TPU-default
    # matmul numerics) with f32 accumulation, so allow ~1e-2.
    ref_f32 = reference(x, conv_w, gamma, beta)
    assert jnp.allclose(out, ref_f32, atol=1e-2, rtol=1e-2), \
        float(jnp.max(jnp.abs(out - ref_f32)))

    # Tight structural check vs a reference with the same numerical contract
    # (bf16 conv operands, f32 accumulation, f32 BN math).
    ref_bf = reference(x, conv_w, gamma, beta, operand_dtype=jnp.bfloat16)
    assert jnp.allclose(out, ref_bf, atol=2e-3, rtol=2e-3), \
        float(jnp.max(jnp.abs(out - ref_bf)))

    # TODO(synk): BatchNorm running-stats update is a training side effect with no
    # influence on the forward output, so it is intentionally not modeled.
    print("KERNEL_OK")
</pallas_src>

<mosaic_0001>
module attributes {stable_mosaic.version = 11 : i64} {
  func.func @_fused_kernel(%arg0: i32, %arg1: memref<1x16x64xf32, #tpu.memory_space<vmem>>, %arg2: memref<576x256xbf16, #tpu.memory_space<vmem>>, %arg3: memref<256x256xf32, #tpu.memory_space<vmem>>, %arg4: memref<1x256xf32, #tpu.memory_space<vmem>>, %arg5: memref<1x256xf32, #tpu.memory_space<vmem>>, %arg6: memref<2x16x256xf32, #tpu.memory_space<vmem>>, %arg7: memref<1x256xf32, #tpu.memory_space<vmem>>, %arg8: memref<1x256xf32, #tpu.memory_space<vmem>>) attributes {dimension_semantics = [#tpu.dimension_semantics<arbitrary>], iteration_bounds = array<i64: 2>, scalar_prefetch = 0 : i64, scratch_operands = 2 : i64, tpu.core_type = #tpu.core_type<tc>, window_params = [{transform_indices = @transform_0, window_bounds = array<i64: 1, 16, 64>}, {pipeline_mode = #tpu.pipeline_mode<synchronous>, transform_indices = @transform_1, window_bounds = array<i64: 576, 256>}, {pipeline_mode = #tpu.pipeline_mode<synchronous>, transform_indices = @transform_2, window_bounds = array<i64: 256, 256>}, {pipeline_mode = #tpu.pipeline_mode<synchronous>, transform_indices = @transform_3, window_bounds = array<i64: 1, 256>}, {pipeline_mode = #tpu.pipeline_mode<synchronous>, transform_indices = @transform_4, window_bounds = array<i64: 1, 256>}, {pipeline_mode = #tpu.pipeline_mode<synchronous>, transform_indices = @transform_5, window_bounds = array<i64: 2, 16, 256>}]} {
    %c0_i32 = arith.constant 0 : i32
    %0 = arith.cmpi eq, %arg0, %c0_i32 : i32
    %1 = arith.extui %0 : i1 to i32
    %c0_i32_0 = arith.constant 0 : i32
    %2 = arith.cmpi ne, %1, %c0_i32_0 : i32
    scf.if %2 {
      %cst_20 = arith.constant 0.000000e+00 : f32
      %40 = vector.broadcast %cst_20 : f32 to vector<1x256xf32>
      %c0_21 = arith.constant 0 : index
      %c0_22 = arith.constant 0 : index
      %41 = vector.load %arg7[%c0_21, %c0_22] : memref<1x256xf32, #tpu.memory_space<vmem>>, vector<1x256xf32>
      tpu.vector_store %arg7[%c0_21, %c0_22], %40 {strides = array<i32>} : memref<1x256xf32, #tpu.memory_space<vmem>>, vector<1x256xf32>,
      %cst_23 = arith.constant 0.000000e+00 : f32
      %42 = vector.broadcast %cst_23 : f32 to vector<1x256xf32>
      %c0_24 = arith.constant 0 : index
      %c0_25 = arith.constant 0 : index
      %43 = vector.load %arg8[%c0_24, %c0_25] : memref<1x256xf32, #tpu.memory_space<vmem>>, vector<1x256xf32>
      tpu.vector_store %arg8[%c0_24, %c0_25], %42 {strides = array<i32>} : memref<1x256xf32, #tpu.memory_space<vmem>>, vector<1x256xf32>,
    } else {
    }
    %c0 = arith.constant 0 : index
    %c0_1 = arith.constant 0 : index
    %c0_2 = arith.constant 0 : index
    %3 = vector.load %arg1[%c0, %c0_1, %c0_2] : memref<1x16x64xf32, #tpu.memory_space<vmem>>, vector<1x16x64xf32>
    %4 = vector.shape_cast %3 : vector<1x16x64xf32> to vector<16x64xf32>
    %cst = arith.constant 0.000000e+00 : f32
    %5 = vector.broadcast %cst : f32 to vector<1x64xf32>
    %cst_3 = arith.constant 0.000000e+00 : f32
    %6 = vector.broadcast %cst_3 : f32 to vector<18x4xf32>
    %7 = tpu.concatenate %5, %4, %5 in 0 : vector<1x64xf32>, vector<16x64xf32>, vector<1x64xf32> -> vector<18x64xf32>
    %8 = tpu.concatenate %6, %7, %6 in 1 : vector<18x4xf32>, vector<18x64xf32>, vector<18x4xf32> -> vector<18x72xf32>
    %9 = vector.extract_strided_slice %8 {offsets = [0, 0], sizes = [16, 64], strides = [1, 1]} : vector<18x72xf32> to vector<16x64xf32>
    %10 = vector.extract_strided_slice %8 {offsets = [0, 4], sizes = [16, 64], strides = [1, 1]} : vector<18x72xf32> to vector<16x64xf32>
    %11 = vector.extract_strided_slice %8 {offsets = [0, 8], sizes = [16, 64], strides = [1, 1]} : vector<18x72xf32> to vector<16x64xf32>
    %12 = vector.extract_strided_slice %8 {offsets = [1, 0], sizes = [16, 64], strides = [1, 1]} : vector<18x72xf32> to vector<16x64xf32>
    %13 = vector.extract_strided_slice %8 {offsets = [1, 4], sizes = [16, 64], strides = [1, 1]} : vector<18x72xf32> to vector<16x64xf32>
    %14 = vector.extract_strided_slice %8 {offsets = [1, 8], sizes = [16, 64], strides = [1, 1]} : vector<18x72xf32> to vector<16x64xf32>
    %15 = vector.extract_strided_slice %8 {offsets = [2, 0], sizes = [16, 64], strides = [1, 1]} : vector<18x72xf32> to vector<16x64xf32>
    %16 = vector.extract_strided_slice %8 {offsets = [2, 4], sizes = [16, 64], strides = [1, 1]} : vector<18x72xf32> to vector<16x64xf32>
    %17 = vector.extract_strided_slice %8 {offsets = [2, 8], sizes = [16, 64], strides = [1, 1]} : vector<18x72xf32> to vector<16x64xf32>
    %18 = tpu.concatenate %9, %10, %11, %12, %13, %14, %15, %16, %17 in 1 : vector<16x64xf32>, vector<16x64xf32>, vector<16x64xf32>, vector<16x64xf32>, vector<16x64xf32>, vector<16x64xf32>, vector<16x64xf32>, vector<16x64xf32>, vector<16x64xf32> -> vector<16x576xf32>
    %19 = arith.truncf %18 : vector<16x576xf32> to vector<16x576xbf16>
    %c0_4 = arith.constant 0 : index
    %c0_5 = arith.constant 0 : index
    %20 = vector.load %arg2[%c0_4, %c0_5] : memref<576x256xbf16, #tpu.memory_space<vmem>>, vector<576x256xbf16>
    %cst_6 = arith.constant dense<0.000000e+00> : vector<16x256xf32>
    %21 = tpu.matmul %19, %20, %cst_6 {dimension_numbers = #tpu.dot_dimension_numbers<[1], [0], [0], [1], [0, 0, 1, 1], [], []>} : vector<16x576xbf16>, vector<576x256xbf16>, vector<16x256xf32> -> vector<16x256xf32>
    %22 = arith.index_cast %arg0 : i32 to index
    %c0_7 = arith.constant 0 : index
    %c0_8 = arith.constant 0 : index
    %23 = vector.load %arg6[%22, %c0_7, %c0_8] : memref<2x16x256xf32, #tpu.memory_space<vmem>>, vector<1x16x256xf32>
    %24 = vector.shape_cast %23 : vector<1x16x256xf32> to vector<16x256xf32>
    %25 = vector.shape_cast %21 : vector<16x256xf32> to vector<1x16x256xf32>
    tpu.vector_store %arg6[%22, %c0_7, %c0_8], %25 {strides = array<i32>} : memref<2x16x256xf32, #tpu.memory_space<vmem>>, vector<1x16x256xf32>,
    %c0_9 = arith.constant 0 : index
    %c0_10 = arith.constant 0 : index
    %26 = vector.load %arg7[%c0_9, %c0_10] : memref<1x256xf32, #tpu.memory_space<vmem>>, vector<1x256xf32>
    %cst_11 = arith.constant dense<0.000000e+00> : vector<256xf32>
    %27 = vector.multi_reduction <add>, %21, %cst_11 [0] : vector<16x256xf32> to vector<256xf32>
    %28 = vector.shape_cast %27 : vector<256xf32> to vector<1x256xf32>
    %29 = arith.addf %26, %28 : vector<1x256xf32>
    %c0_12 = arith.constant 0 : index
    %c0_13 = arith.constant 0 : index
    %30 = vector.load %arg7[%c0_12, %c0_13] : memref<1x256xf32, #tpu.memory_space<vmem>>, vector<1x256xf32>
    tpu.vector_store %arg7[%c0_12, %c0_13], %29 {strides = array<i32>} : memref<1x256xf32, #tpu.memory_space<vmem>>, vector<1x256xf32>,
    %c0_14 = arith.constant 0 : index
    %c0_15 = arith.constant 0 : index
    %31 = vector.load %arg8[%c0_14, %c0_15] : memref<1x256xf32, #tpu.memory_space<vmem>>, vector<1x256xf32>
    %32 = arith.mulf %21, %21 : vector<16x256xf32>
    %cst_16 = arith.constant dense<0.000000e+00> : vector<256xf32>
    %33 = vector.multi_reduction <add>, %32, %cst_16 [0] : vector<16x256xf32> to vector<256xf32>
    %34 = vector.shape_cast %33 : vector<256xf32> to vector<1x256xf32>
    %35 = arith.addf %31, %34 : vector<1x256xf32>
    %c0_17 = arith.constant 0 : index
    %c0_18 = arith.constant 0 : index
    %36 = vector.load %arg8[%c0_17, %c0_18] : memref<1x256xf32, #tpu.memory_space<vmem>>, vector<1x256xf32>
    tpu.vector_store %arg8[%c0_17, %c0_18], %35 {strides = array<i32>} : memref<1x256xf32, #tpu.memory_space<vmem>>, vector<1x256xf32>,
    %c1_i32 = arith.constant 1 : i32
    %37 = arith.cmpi eq, %arg0, %c1_i32 : i32
    %38 = arith.extui %37 : i1 to i32
    %c0_i32_19 = arith.constant 0 : i32
    %39 = arith.cmpi ne, %38, %c0_i32_19 : i32
    scf.if %39 {
      %c0_20 = arith.constant 0 : index
      %c0_21 = arith.constant 0 : index
      %40 = vector.load %arg7[%c0_20, %c0_21] : memref<1x256xf32, #tpu.memory_space<vmem>>, vector<1x256xf32>
      %c0_22 = arith.constant 0 : index
      %c0_23 = arith.constant 0 : index
      %41 = vector.load %arg8[%c0_22, %c0_23] : memref<1x256xf32, #tpu.memory_space<vmem>>, vector<1x256xf32>
      %42 = tpu.concatenate %40, %41 in 0 : vector<1x256xf32>, vector<1x256xf32> -> vector<2x256xf32>
      %c0_24 = arith.constant 0 : index
      %c0_25 = arith.constant 0 : index
      %43 = vector.load %arg3[%c0_24, %c0_25] : memref<256x256xf32, #tpu.memory_space<vmem>>, vector<256x256xf32>
      %cst_26 = arith.constant dense<0.000000e+00> : vector<2x256xf32>
      %44 = tpu.matmul %42, %43, %cst_26 {dimension_numbers = #tpu.dot_dimension_numbers<[1], [0], [0], [1], [0, 0, 1, 1], [], []>, precision = #tpu.contract_precision<fp32>} : vector<2x256xf32>, vector<256x256xf32>, vector<2x256xf32> -> vector<2x256xf32>
      %45 = vector.extract_strided_slice %44 {offsets = [0, 0], sizes = [1, 256], strides = [1, 1]} : vector<2x256xf32> to vector<1x256xf32>
      %cst_27 = arith.constant 4.8828125E-4 : f32
      %46 = vector.broadcast %cst_27 : f32 to vector<1x256xf32>
      %47 = arith.mulf %45, %46 : vector<1x256xf32>
      %48 = vector.extract_strided_slice %44 {offsets = [1, 0], sizes = [1, 256], strides = [1, 1]} : vector<2x256xf32> to vector<1x256xf32>
      %cst_28 = arith.constant 4.8828125E-4 : f32
      %49 = vector.broadcast %cst_28 : f32 to vector<1x256xf32>
      %50 = arith.mulf %48, %49 : vector<1x256xf32>
      %51 = arith.mulf %47, %47 : vector<1x256xf32>
      %52 = arith.subf %50, %51 : vector<1x256xf32>
      %c0_29 = arith.constant 0 : index
      %c0_30 = arith.constant 0 : index
      %53 = vector.load %arg4[%c0_29, %c0_30] : memref<1x256xf32, #tpu.memory_space<vmem>>, vector<1x256xf32>
      %cst_31 = arith.constant 9.99999974E-6 : f32
      %54 = vector.broadcast %cst_31 : f32 to vector<1x256xf32>
      %55 = arith.addf %52, %54 : vector<1x256xf32>
      %56 = math.rsqrt %55 : vector<1x256xf32>
      %57 = arith.mulf %53, %56 : vector<1x256xf32>
      %c0_32 = arith.constant 0 : index
      %c0_33 = arith.constant 0 : index
      %58 = vector.load %arg5[%c0_32, %c0_33] : memref<1x256xf32, #tpu.memory_space<vmem>>, vector<1x256xf32>
      %59 = arith.mulf %47, %57 : vector<1x256xf32>
      %60 = arith.subf %58, %59 : vector<1x256xf32>
      %c0_34 = arith.constant 0 : index
      %c0_35 = arith.constant 0 : index
      %c0_36 = arith.constant 0 : index
      %61 = vector.load %arg6[%c0_34, %c0_35, %c0_36] : memref<2x16x256xf32, #tpu.memory_space<vmem>>, vector<1x16x256xf32>
      %62 = vector.shape_cast %61 : vector<1x16x256xf32> to vector<16x256xf32>
      %63 = vector.broadcast %57 : vector<1x256xf32> to vector<16x256xf32>
      %64 = arith.mulf %62, %63 : vector<16x256xf32>
      %65 = vector.broadcast %60 : vector<1x256xf32> to vector<16x256xf32>
      %66 = arith.addf %64, %65 : vector<16x256xf32>
      %cst_37 = arith.constant 0.000000e+00 : f32
      %67 = vector.broadcast %cst_37 : f32 to vector<16x256xf32>
      %68 = arith.maximumf %66, %67 : vector<16x256xf32>
      %c0_38 = arith.constant 0 : index
      %c0_39 = arith.constant 0 : index
      %c0_40 = arith.constant 0 : index
      %69 = vector.load %arg6[%c0_38, %c0_39, %c0_40] : memref<2x16x256xf32, #tpu.memory_space<vmem>>, vector<1x16x256xf32>
      %70 = vector.shape_cast %69 : vector<1x16x256xf32> to vector<16x256xf32>
      %71 = vector.shape_cast %68 : vector<16x256xf32> to vector<1x16x256xf32>
      tpu.vector_store %arg6[%c0_38, %c0_39, %c0_40], %71 {strides = array<i32>} : memref<2x16x256xf32, #tpu.memory_space<vmem>>, vector<1x16x256xf32>,
      %c1 = arith.constant 1 : index
      %c0_41 = arith.constant 0 : index
      %c0_42 = arith.constant 0 : index
      %72 = vector.load %arg6[%c1, %c0_41, %c0_42] : memref<2x16x256xf32, #tpu.memory_space<vmem>>, vector<1x16x256xf32>
      %73 = vector.shape_cast %72 : vector<1x16x256xf32> to vector<16x256xf32>
      %74 = vector.broadcast %57 : vector<1x256xf32> to vector<16x256xf32>
      %75 = arith.mulf %73, %74 : vector<16x256xf32>
      %76 = vector.broadcast %60 : vector<1x256xf32> to vector<16x256xf32>
      %77 = arith.addf %75, %76 : vector<16x256xf32>
      %cst_43 = arith.constant 0.000000e+00 : f32
      %78 = vector.broadcast %cst_43 : f32 to vector<16x256xf32>
      %79 = arith.maximumf %77, %78 : vector<16x256xf32>
      %c1_44 = arith.constant 1 : index
      %c0_45 = arith.constant 0 : index
      %c0_46 = arith.constant 0 : index
      %80 = vector.load %arg6[%c1_44, %c0_45, %c0_46] : memref<2x16x256xf32, #tpu.memory_space<vmem>>, vector<1x16x256xf32>
      %81 = vector.shape_cast %80 : vector<1x16x256xf32> to vector<16x256xf32>
      %82 = vector.shape_cast %79 : vector<16x256xf32> to vector<1x16x256xf32>
      tpu.vector_store %arg6[%c1_44, %c0_45, %c0_46], %82 {strides = array<i32>} : memref<2x16x256xf32, #tpu.memory_space<vmem>>, vector<1x16x256xf32>,
    } else {
    }
    return
  }
  func.func @transform_0(%arg0: i32) -> (i32, i32, i32) {
    %c0_i32 = arith.constant 0 : i32
    %c0_i32_0 = arith.constant 0 : i32
    %c0_i32_1 = arith.constant 0 : i32
    return %arg0, %c0_i32, %c0_i32_0 : i32, i32, i32
  }
  func.func @transform_1(%arg0: i32) -> (i32, i32) {
    %c0_i32 = arith.constant 0 : i32
    %c0_i32_0 = arith.constant 0 : i32
    %c0_i32_1 = arith.constant 0 : i32
    return %c0_i32, %c0_i32_0 : i32, i32
  }
  func.func @transform_2(%arg0: i32) -> (i32, i32) {
    %c0_i32 = arith.constant 0 : i32
    %c0_i32_0 = arith.constant 0 : i32
    %c0_i32_1 = arith.constant 0 : i32
    return %c0_i32, %c0_i32_0 : i32, i32
  }
  func.func @transform_3(%arg0: i32) -> (i32, i32) {
    %c0_i32 = arith.constant 0 : i32
    %c0_i32_0 = arith.constant 0 : i32
    %c0_i32_1 = arith.constant 0 : i32
    return %c0_i32, %c0_i32_0 : i32, i32
  }
  func.func @transform_4(%arg0: i32) -> (i32, i32) {
    %c0_i32 = arith.constant 0 : i32
    %c0_i32_0 = arith.constant 0 : i32
    %c0_i32_1 = arith.constant 0 : i32
    return %c0_i32, %c0_i32_0 : i32, i32
  }
  func.func @transform_5(%arg0: i32) -> (i32, i32, i32) {
    %c0_i32 = arith.constant 0 : i32
    %c0_i32_0 = arith.constant 0 : i32
    %c0_i32_1 = arith.constant 0 : i32
    %c0_i32_2 = arith.constant 0 : i32
    return %c0_i32, %c0_i32_0, %c0_i32_1 : i32, i32, i32
  }
}

</mosaic_0001>

<bundles_post_ra>
// kernel: tile.9
= control target key start
LH: loop header
LB: loop body
LE: loop exit
PB: predicated region body
PF: predicated region fallthrough
CT: control target
= control target key end

     0   :  { %vm8_vm0 = vcmask 31744   ;;  %s40_s8 = smov 4   ;;  %s41_s9 = smov 8   ;;  %vm14_vm1 = vcmask 130144   ;;  %vm20_vm2 = vcmask 97344   ;;  %vm26_vm3 = vcmask 64544   ;;  %s58_s0 = inlined_call_operand.vmem [shape: f32[4,4], index: 0, kind: input, shape index: {}]   ;;  %s59_s1 = inlined_call_operand.vmem [shape: f32[16], index: 1, kind: output, shape index: {}]  }
   0x1   :  { %v5_v0 = vld [vmem:[%s58_s0] sm:$0xf]  ;;  %s39_s0 = smov 12  }
   0x2   :  { %6 = vst [vmem:[#allocation1] sm:$0xf] %v5_v0 }
   0x9   :  { %v11_v1 = vld [vmem:[#allocation1 + $0x3] sm:$0x1]   ;;  %v23_v2 = vld [vmem:[#allocation1 + $0x1] sm:$0x1]   ;;  %v7_v3 = vld [vmem:[#allocation1] sm:$0x1]  }
   0xa   :  { %12 = vrot.lane.b32.xlu0 %v11_v1, %s39_s0  ;;  %24 = vrot.lane.b32.xlu1 %v23_v2, %s40_s8  ;;  %v17_v4 = vld [vmem:[#allocation1 + $0x2] sm:$0x1]   ;;  %9 = vst.msk [vmem:[#allocation0] sm:$0x1] %vm8_vm0, %v7_v3  }
   0xe   :  { %18 = vrot.lane.b32.xlu0 %v17_v4, %s41_s9 }
  0x7c   :  { %v13_v5 = vpop.permute.xlu0 %12   ;;  %v25_v6 = vpop.permute.xlu1 %24  }
  0x7d   :  { %15 = vst.msk [vmem:[#allocation0] sm:$0x1] %vm14_vm1, %v13_v5  }
  0x80   :  { %v19_v7 = vpop.permute.xlu0 %18  }
  0x81   :  { %21 = vst.msk [vmem:[#allocation0] sm:$0x1] %vm20_vm2, %v19_v7  }
  0x82   :  { %27 = vst.msk [vmem:[#allocation0] sm:$0x1] %vm26_vm3, %v25_v6  }
  0x89   :  { %v32_v8 = vld [vmem:[#allocation0] sm:$0x1] }
  0x8a   :  { %35 = vst [vmem:[%s59_s1] sm:$0x1] %v32_v8 }

// kernel: tile.10
= control target key start
LH: loop header
LB: loop body
LE: loop exit
PB: predicated region body
PF: predicated region fallthrough
CT: control target
= control target key end

     0   :  { %s28_s0 = inlined_call_operand.vmem [shape: f32[16], index: 0, kind: input, shape index: {}]   ;;  %s29_s1 = inlined_call_operand.vmem [shape: f32[16,16], index: 1, kind: output, shape index: {}]  }
   0x1   :  { %v4_v0 = vld [vmem:[%s28_s0] ss:$0 sm:$0xff] }
   0x2   :  { %5 = vst [vmem:[%s29_s1] sm:$0xff] %v4_v0  ;;  %8 = vst [vmem:[%s29_s1 + $0x8] sm:$0xff] %v4_v0 }

// kernel: tile.11
= control target key start
LH: loop header
LB: loop body
LE: loop exit
PB: predicated region body
PF: predicated region fallthrough
CT: control target
= control target key end

     0   :  { %s7_s6 = smov 3  ;;  %s21_s9 = smov 3  ;;  %vm4_vm0 = vcmask 130048   ;;  %vm11_vm1 = vcmask 1048448   ;;  %vm18_vm2 = vcmask 917248   ;;  %vm25_vm3 = vcmask 786048   ;;  %s131_s0 = inlined_call_operand.vmem [shape: f32[16,16], index: 0, kind: input, shape index: {}]   ;;  %s132_s1 = inlined_call_operand.vmem [shape: f32[1,256], index: 1, kind: output, shape index: {}]  }
   0x1   :  { %v69_v0 = vld [vmem:[%s131_s0 + $0x7] ss:$8 sm:%s7_s6]   ;;  %s84_s10 = smov 112   ;;  %v71_v1 = vld [vmem:[%s131_s0 + $0x5] ss:$8 sm:%s21_s9]   ;;  %s14_s13 = smov 3 }
   0x2   :  { %9 = vrot.lane.b32.xlu0 %v69_v0, %s84_s10  ;;  %s85_s14 = smov 80   ;;  %v70_v2 = vld [vmem:[%s131_s0 + $0x6] ss:$8 sm:%s14_s13]   ;;  %s28_s17 = smov 3  ;;  %vm32_vm4 = vcmask 654848   ;;  %vm39_vm5 = vcmask 523648  }
   0x3   :  { %23 = vrot.lane.b32.xlu1 %v71_v1, %s85_s14  ;;  %v72_v3 = vld [vmem:[%s131_s0 + $0x4] ss:$8 sm:%s28_s17]   ;;  %s35_s20 = smov 3  ;;  %s42_s21 = smov 3  ;;  %vm46_vm6 = vcmask 392448   ;;  %vm53_vm7 = vcmask 261248  }
   0x4   :  { %s86_s22 = smov 96   ;;  %s87_s23 = smov 64   ;;  %v73_v4 = vld [vmem:[%s131_s0 + $0x3] ss:$8 sm:%s35_s20]   ;;  %v74_v5 = vld [vmem:[%s131_s0 + $0x2] ss:$8 sm:%s42_s21]  }
   0x5   :  { %s2_s26 = smov 3  ;;  %s49_s29 = smov 3 }
   0x6   :  { %16 = vrot.lane.b32.xlu0 %v70_v2, %s86_s22  ;;  %v3_v6 = vld [vmem:[%s131_s0] ss:$8 sm:%s2_s26]   ;;  %s88_s3 = smov 48   ;;  %s89_s4 = smov 32  }
   0x7   :  { %30 = vrot.lane.b32.xlu1 %v72_v3, %s87_s23  ;;  %5 = vst.msk [vmem:[#allocation0] ss:$8 sm:$0x3] %vm4_vm0, %v3_v6   ;;  %v75_v7 = vld [vmem:[%s131_s0 + $0x1] ss:$8 sm:%s49_s29]   ;;  %s90_s0 = smov 16  }
   0xa   :  { %37 = vrot.lane.b32.xlu0 %v73_v4, %s88_s3 }
   0xb   :  { %44 = vrot.lane.b32.xlu1 %v74_v5, %s89_s4 }
   0xe   :  { %51 = vrot.lane.b32.xlu0 %v75_v7, %s90_s0 }
  0x74   :  { %v10_v8 = vpop.permute.xlu0 %9  }
  0x75   :  { %12 = vst.msk [vmem:[#allocation0] ss:$8 sm:$0x3] %vm11_vm1, %v10_v8   ;;  %v24_v9 = vpop.permute.xlu1 %23  }
  0x78   :  { %v17_v10 = vpop.permute.xlu0 %16  }
  0x79   :  { %19 = vst.msk [vmem:[#allocation0] ss:$8 sm:$0x3] %vm18_vm2, %v17_v10   ;;  %v31_v11 = vpop.permute.xlu1 %30  }
  0x7a   :  { %26 = vst.msk [vmem:[#allocation0] ss:$8 sm:$0x3] %vm25_vm3, %v24_v9  }
  0x7b   :  { %33 = vst.msk [vmem:[#allocation0] ss:$8 sm:$0x3] %vm32_vm4, %v31_v11  }
  0x7c   :  { %v38_v12 = vpop.permute.xlu0 %37  }
  0x7d   :  { %40 = vst.msk [vmem:[#allocation0] ss:$8 sm:$0x3] %vm39_vm5, %v38_v12   ;;  %v45_v13 = vpop.permute.xlu1 %44  }
  0x7e   :  { %47 = vst.msk [vmem:[#allocation0] ss:$8 sm:$0x3] %vm46_vm6, %v45_v13  }
  0x80   :  { %v52_v14 = vpop.permute.xlu0 %51  }
  0x81   :  { %54 = vst.msk [vmem:[#allocation0] ss:$8 sm:$0x3] %vm53_vm7, %v52_v14  }
  0x88   :  { %v59_v15 = vld [vmem:[#allocation0] sm:$0x1]  ;;  %v64_v16 = vld [vmem:[#allocation0 + $0x8] sm:$0x1] }
  0x89   :  { %62 = vst [vmem:[%s132_s1] sm:$0x1] %v59_v15  ;;  %76 = vst [vmem:[%s132_s1 + $0x1] sm:$0x1] %v64_v16 }

// kernel: subpixel_block_forward.1
= control target key start
LH: loop header
LB: loop body
LE: loop exit
PB: predicated region body
PF: predicated region fallthrough
CT: control target
= control target key end

     0   :  { %s2815_s18 = smov 0   ;;  %s4553_s0 = inlined_call_operand.vmem [shape: f32[2,16,64], index: 0, kind: input, shape index: {}]   ;;  %s4554_s1 = inlined_call_operand.vmem [shape: bf16[576,256], index: 1, kind: input, shape index: {}]   ;;  %s4555_s2 = inlined_call_operand.vmem [shape: f32[256,256], index: 2, kind: input, shape index: {}]   ;;  %s4556_s3 = inlined_call_operand.vmem [shape: f32[1,256], index: 3, kind: input, shape index: {}]   ;;  %s4557_s4 = inlined_call_operand.vmem [shape: f32[1,256], index: 4, kind: input, shape index: {}]   ;;  %s4558_s5 = inlined_call_operand.vmem [shape: f32[2,16,256], index: 5, kind: output, shape index: {}]  }
   0x1 LB: > { %s2821_s19 = sadd.s32 4294967295, %s2774_s18   ;;  %p2507_p0 = scmp.ge.s32.totalorder %s2774_s18, 1  ;;  %s2774_s18 = sphi %s2815_s18, %s15_s18  }
   0x2   : > { %p182_p1 = scmp.lt.s32.totalorder %s2774_s18, 3 }
   0x4   : > { %p183_p2 = pnand %p2507_p0, %p182_p1 }
   0x6   : > { %186 = sbr.rel (%p183_p2) target bundleno = 1001 (0x3e9), region = 40 }
   0xb   : > { %p205_p3 = scmp.lt.s32.totalorder %s2821_s19, 1  ;;  %p2510_p4 = scmp.ne.s32.totalorder %s2821_s19, 0 }
   0xd   : > { %s206_s20 = scalar_select %p205_p3, %s2821_s19, 1 }
   0xe   : > { %214 = sbr.rel (%p2510_p4) target bundleno = 23 (0x17), region = 44 }
   0xf   : > { %s2597_s21 = sshll.u32 %s206_s20, 4 }
  0x10   : > { %s209_s24 = scalar_lea.vmem %s4553_s0, %s2597_s21 }
  0x13   : > { %v215_v0 = vlaneseq  ;;  %v2776_v1 = vmov 0.0  }
  0x15   : > { %vm217_vm0 = vcmp.lt.s32.totalorder %v215_v0, 256 }
  0x16   : > { %219 = vst.msk [vmem:[#allocation2] sm:$0x3] %vm217_vm0, %v2776_v1  ;;  %220 = vst.msk [vmem:[#allocation3] sm:$0x3] %vm217_vm0, %v2776_v1 }
  0x17 PF: > { %v221_v2 = vld [vmem:[%s209_s24] sm:$0xff]  ;;  %v222_v3 = vld [vmem:[%s209_s24 + $0x8] sm:$0xff]  ;;  %vm225_vm1 = vcmask 1040384   ;;  %s2777_s25 = smov 4   ;;  %v2656_v10 = vld [vmem:[%s4554_s1 + $0x74] ss:$8 sps:$4 sm:$0xff]  }
  0x18   : > { %v226_v4 = vrot.slane %v221_v2, 7  ;;  %v227_v5 = vrot.slane %v222_v3, 7  ;;  %v2658_v11 = vld [vmem:[%s4554_s1 + $0x70] ss:$8 sps:$4 sm:$0xff]   ;;  %v2659_v12 = vld [vmem:[%s4554_s1 + $0x64] ss:$8 sps:$4 sm:$0xff]   ;;  %760 = vmatprep.subr.bf16.mxu0 %v2656_v10 }
  0x19   : > { %v2664_v13 = vld [vmem:[%s4554_s1 + $0x174] ss:$8 sps:$4 sm:$0xff]   ;;  %v2667_v14 = vld [vmem:[%s4554_s1 + $0x170] ss:$8 sps:$4 sm:$0xff]   ;;  %761 = vmatpush1.bf16.msra.mxu0 %v2658_v11  ;;  %v2661_v15 = vld [vmem:[%s4554_s1 + $0x60] ss:$8 sps:$4 sm:$0xff]  }
  0x1a   : > { %v228_v6 = vsel %vm225_vm1, %v226_v4, %v227_v5  ;;  %v231_v7 = vsel %vm225_vm1, 0.0, %v226_v4  ;;  %v232_v9 = vsel %vm225_vm1, %v227_v5, 0.0  ;;  %803 = vmatprep.subr.bf16.mxu1 %v2664_v13  ;;  %v2670_v16 = vld [vmem:[%s4554_s1 + $0x164] ss:$8 sps:$4 sm:$0xff]   ;;  %762 = vmatprep.subr.bf16.mxu0 %v2659_v12  ;;  %v2662_v17 = vld [vmem:[%s4554_s1 + $0x54] ss:$8 sps:$4 sm:$0xff]  }
  0x1b   : > { %v2616_v8 = vpack.i.bf16 %v228_v6, %v231_v7  ;;  %804 = vmatpush1.bf16.msra.mxu1 %v2667_v14  ;;  %v2673_v18 = vld [vmem:[%s4554_s1 + $0x160] ss:$8 sps:$4 sm:$0xff]   ;;  %v2676_v19 = vld [vmem:[%s4554_s1 + $0x154] ss:$8 sps:$4 sm:$0xff]   ;;  %v2666_v20 = vld [vmem:[%s4554_s1 + $0x50] ss:$8 sps:$4 sm:$0xff]  }
  0x1c   : > { %805 = vmatprep.subr.bf16.mxu1 %v2670_v16  ;;  %v2668_v21 = vld [vmem:[%s4554_s1 + $0x44] ss:$8 sps:$4 sm:$0xff]   ;;  %v2679_v22 = vld [vmem:[%s4554_s1 + $0x150] ss:$8 sps:$4 sm:$0xff]   ;;  %v2672_v24 = vld [vmem:[%s4554_s1 + $0x40] ss:$8 sps:$4 sm:$0xff]  }
  0x1d   : > { %2617 = vrot.lane.b32.xlu0 %v2616_v8, %s2777_s25  ;;  %763 = vmatpush1.bf16.msra.mxu0 %v2661_v15  ;;  %v2682_v23 = vld [vmem:[%s4554_s1 + $0x144] ss:$8 sps:$4 sm:$0xff]   ;;  %v2674_v25 = vld [vmem:[%s4554_s1 + $0x34] ss:$8 sps:$4 sm:$0xff]   ;;  %v2685_v26 = vld [vmem:[%s4554_s1 + $0x140] ss:$8 sps:$4 sm:$0xff]  }
  0x1e   : > { %764 = vmatprep.subr.bf16.mxu0 %v2662_v17  ;;  %v2688_v27 = vld [vmem:[%s4554_s1 + $0x134] ss:$8 sps:$4 sm:$0xff]   ;;  %v2678_v28 = vld [vmem:[%s4554_s1 + $0x30] ss:$8 sps:$4 sm:$0xff]   ;;  %v2680_v29 = vld [vmem:[%s4554_s1 + $0x24] ss:$8 sps:$4 sm:$0xff]  }
  0x1f   : > { %806 = vmatpush1.bf16.msra.mxu1 %v2673_v18  ;;  %v2691_v30 = vld [vmem:[%s4554_s1 + $0x130] ss:$8 sps:$4 sm:$0xff]   ;;  %v2694_v31 = vld [vmem:[%s4554_s1 + $0x124] ss:$8 sps:$4 sm:$0xff]   ;;  %v2684_v32 = vld [vmem:[%s4554_s1 + $0x20] ss:$8 sps:$4 sm:$0xff]  }
  0x20   : > { %807 = vmatprep.subr.bf16.mxu1 %v2676_v19  ;;  %v2686_v33 = vld [vmem:[%s4554_s1 + $0x14] ss:$8 sps:$4 sm:$0xff]   ;;  %v2697_v34 = vld [vmem:[%s4554_s1 + $0x120] ss:$8 sps:$4 sm:$0xff]   ;;  %v2690_v36 = vld [vmem:[%s4554_s1 + $0x10] ss:$8 sps:$4 sm:$0xff]  }
  0x21   : > { %239 = vrot.lane.b32.xlu0 %v232_v9, %s2777_s25  ;;  %765 = vmatpush1.bf16.msra.mxu0 %v2666_v20  ;;  %v2700_v35 = vld [vmem:[%s4554_s1 + $0x114] ss:$8 sps:$4 sm:$0xff]   ;;  %v2692_v37 = vld [vmem:[%s4554_s1 + $0x4] ss:$8 sps:$4 sm:$0xff]   ;;  %v2703_v38 = vld [vmem:[%s4554_s1 + $0x110] ss:$8 sps:$4 sm:$0xff]  }
  0x22   : > { %766 = vmatprep.subr.bf16.mxu0 %v2668_v21  ;;  %v2706_v39 = vld [vmem:[%s4554_s1 + $0x104] ss:$8 sps:$4 sm:$0xff]   ;;  %v2696_v40 = vld [vmem:[%s4554_s1] ss:$8 sps:$4 sm:$0xff]   ;;  %v2698_v41 = vld [vmem:[%s4554_s1 + $0xf4] ss:$8 sps:$4 sm:$0xff]  }
  0x23   : > { %808 = vmatpush1.bf16.msra.mxu1 %v2679_v22  ;;  %v2709_v42 = vld [vmem:[%s4554_s1 + $0x100] ss:$8 sps:$4 sm:$0xff]   ;;  %v2712_v43 = vld [vmem:[%s4554_s1 + $0x1f4] ss:$8 sps:$4 sm:$0xff]   ;;  %v2702_v44 = vld [vmem:[%s4554_s1 + $0xf0] ss:$8 sps:$4 sm:$0xff]  }
  0x24   : > { %809 = vmatprep.subr.bf16.mxu1 %v2682_v23  ;;  %v2704_v45 = vld [vmem:[%s4554_s1 + $0xe4] ss:$8 sps:$4 sm:$0xff]   ;;  %v2715_v46 = vld [vmem:[%s4554_s1 + $0x1f0] ss:$8 sps:$4 sm:$0xff]   ;;  %v2708_v48 = vld [vmem:[%s4554_s1 + $0xe0] ss:$8 sps:$4 sm:$0xff]  }
  0x25   : > { %767 = vmatpush1.bf16.msra.mxu0 %v2672_v24  ;;  %v2718_v47 = vld [vmem:[%s4554_s1 + $0x1e4] ss:$8 sps:$4 sm:$0xff]   ;;  %v2710_v49 = vld [vmem:[%s4554_s1 + $0xd4] ss:$8 sps:$4 sm:$0xff]   ;;  %v2721_v50 = vld [vmem:[%s4554_s1 + $0x1e0] ss:$8 sps:$4 sm:$0xff]  }
  0x26   : > { %768 = vmatprep.subr.bf16.mxu0 %v2674_v25  ;;  %v2724_v51 = vld [vmem:[%s4554_s1 + $0x1d4] ss:$8 sps:$4 sm:$0xff]   ;;  %v2714_v52 = vld [vmem:[%s4554_s1 + $0xd0] ss:$8 sps:$4 sm:$0xff]   ;;  %v2716_v53 = vld [vmem:[%s4554_s1 + $0xc4] ss:$8 sps:$4 sm:$0xff]  }
  0x27   : > { %810 = vmatpush1.bf16.msra.mxu1 %v2685_v26  ;;  %v2727_v54 = vld [vmem:[%s4554_s1 + $0x1d0] ss:$8 sps:$4 sm:$0xff]   ;;  %v2730_v55 = vld [vmem:[%s4554_s1 + $0x1c4] ss:$8 sps:$4 sm:$0xff]   ;;  %v2720_v56 = vld [vmem:[%s4554_s1 + $0xc0] ss:$8 sps:$4 sm:$0xff]  }
  0x28   : > { %811 = vmatprep.subr.bf16.mxu1 %v2688_v27  ;;  %v2722_v57 = vld [vmem:[%s4554_s1 + $0xb4] ss:$8 sps:$4 sm:$0xff]   ;;  %v2733_v58 = vld [vmem:[%s4554_s1 + $0x1c0] ss:$8 sps:$4 sm:$0xff]   ;;  %v2726_v59 = vld [vmem:[%s4554_s1 + $0xb0] ss:$8 sps:$4 sm:$0xff]  }
  0x29   : > { %769 = vmatpush1.bf16.msra.mxu0 %v2678_v28  ;;  %v2728_v60 = vld [vmem:[%s4554_s1 + $0xa4] ss:$8 sps:$4 sm:$0xff]   ;;  %v2732_v61 = vld [vmem:[%s4554_s1 + $0xa0] ss:$8 sps:$4 sm:$0xff]   ;;  %v2734_v62 = vld [vmem:[%s4554_s1 + $0x94] ss:$8 sps:$4 sm:$0xff]  }
  0x2a   : > { %770 = vmatprep.subr.bf16.mxu0 %v2680_v29  ;;  %v2736_v63 = vld [vmem:[%s4554_s1 + $0x1b4] ss:$8 sps:$4 sm:$0xff]   ;;  %v2738_v0 = vld [vmem:[%s4554_s1 + $0x90] ss:$8 sps:$4 sm:$0xff]   ;;  %v2740_v2 = vld [vmem:[%s4554_s1 + $0x84] ss:$8 sps:$4 sm:$0xff]  }
  0x2b   : > { %812 = vmatpush1.bf16.msra.mxu1 %v2691_v30  ;;  %v2739_v1 = vld [vmem:[%s4554_s1 + $0x1b0] ss:$8 sps:$4 sm:$0xff]   ;;  %v2742_v3 = vld [vmem:[%s4554_s1 + $0x1a4] ss:$8 sps:$4 sm:$0xff]   ;;  %v2744_v4 = vld [vmem:[%s4554_s1 + $0x80] ss:$8 sps:$4 sm:$0xff]  }
  0x2c   : > { %813 = vmatprep.subr.bf16.mxu1 %v2694_v31  ;;  %vm244_vm2 = vcmask 31744   ;;  %v2745_v6 = vld [vmem:[%s4554_s1 + $0x1a0] ss:$8 sps:$4 sm:$0xff]   ;;  %vm248_vm3 = vcmask 556032   ;;  %v2746_v11 = vld [vmem:[%s4554_s1 + $0x194] ss:$8 sps:$4 sm:$0xff]  }
  0x2d   : > { %771 = vmatpush1.bf16.msra.mxu0 %v2684_v32  ;;  %v2750_v12 = vld [vmem:[%s4554_s1 + $0x234] ss:$8 sps:$4 sm:$0xff]   ;;  %v2751_v16 = vld [vmem:[%s4554_s1 + $0x190] ss:$8 sps:$4 sm:$0xff]   ;;  %vm267_vm4 = vcmask 1046528   ;;  %s2778_s12 = smov 60  }
  0x2e   : > { %772 = vmatprep.subr.bf16.mxu0 %v2686_v33  ;;  %s2779_s13 = smov 120   ;;  %v2752_v24 = vld [vmem:[%s4554_s1 + $0x184] ss:$8 sps:$4 sm:$0xff]   ;;  %v2757_v25 = vld [vmem:[%s4554_s1 + $0x180] ss:$8 sps:$4 sm:$0xff]   ;;  %vm291_vm5 = vcmask 1045504  }
  0x2f   : > { %814 = vmatpush1.bf16.msra.mxu1 %v2697_v34  ;;  %s2780_s20 = smov 124   ;;  %s2781_s21 = smov 64   ;;  %vm311_vm6 = vcmask 523264  }
  0x30   : > { %815 = vmatprep.subr.bf16.mxu1 %v2700_v35  ;;  %s2782_s22 = smov 56   ;;  %p2586_p5 = scmp.ne.s32.totalorder %s2821_s19, 1 }
  0x31   : > { %773 = vmatpush1.bf16.msra.mxu0 %v2690_v36 }
  0x32   : > { %774 = vmatprep.subr.bf16.mxu0 %v2692_v37 }
  0x33   : > { %816 = vmatpush1.bf16.msra.mxu1 %v2703_v38 }
  0x34   : > { %817 = vmatprep.subr.bf16.mxu1 %v2706_v39 }
  0x35   : > { %775 = vmatpush1.bf16.msra.mxu0 %v2696_v40 }
  0x36   : > { %776 = vmatprep.subr.bf16.mxu0 %v2698_v41 }
  0x37   : > { %818 = vmatpush1.bf16.msra.mxu1 %v2709_v42 }
  0x38   : > { %819 = vmatprep.subr.bf16.mxu1 %v2712_v43 }
  0x39   : > { %777 = vmatpush2.bf16.msra.mxu0 %v2702_v44 }
  0x3a   : > { %778 = vmatprep.subr.bf16.mxu0 %v2704_v45 }
  0x3b   : > { %820 = vmatpush2.bf16.msra.mxu1 %v2715_v46 }
  0x3c   : > { %821 = vmatprep.subr.bf16.mxu1 %v2718_v47 }
  0x3d   : > { %779 = vmatpush2.bf16.msra.mxu0 %v2708_v48 }
  0x3e   : > { %780 = vmatprep.subr.bf16.mxu0 %v2710_v49  ;;  %v2748_v49 = vld [vmem:[%s4554_s1 + $0x230] ss:$8 sps:$4 sm:$0xff]  }
  0x3f   : > { %822 = vmatpush2.bf16.msra.mxu1 %v2721_v50 }
  0x40   : > { %823 = vmatprep.subr.bf16.mxu1 %v2724_v51 }
  0x41   : > { %781 = vmatpush2.bf16.msra.mxu0 %v2714_v52 }
  0x42   : > { %782 = vmatprep.subr.bf16.mxu0 %v2716_v53  ;;  %v2756_v53 = vld [vmem:[%s4554_s1 + $0x224] ss:$8 sps:$4 sm:$0xff]  }
  0x43   : > { %824 = vmatpush2.bf16.msra.mxu1 %v2727_v54 }
  0x44   : > { %825 = vmatprep.subr.bf16.mxu1 %v2730_v55 }
  0x45   : > { %783 = vmatpush2.bf16.msra.mxu0 %v2720_v56 }
  0x46   : > { %784 = vmatprep.subr.bf16.mxu0 %v2722_v57 }
  0x47   : > { %826 = vmatpush2.bf16.msra.mxu1 %v2733_v58 }
  0x48   : > { %827 = vmatprep.subr.bf16.mxu1 %v2736_v63 }
  0x49   : > { %785 = vmatpush2.bf16.msra.mxu0 %v2726_v59  ;;  %v2754_v59 = vld [vmem:[%s4554_s1 + $0x220] ss:$8 sps:$4 sm:$0xff]  }
  0x4a   : > { %786 = vmatprep.subr.bf16.mxu0 %v2728_v60  ;;  %v2783_v60 = vmov 0  }
  0x4b   : > { %828 = vmatpush2.bf16.msra.mxu1 %v2739_v1  ;;  %v2760_v1 = vld [vmem:[%s4554_s1 + $0x214] ss:$8 sps:$4 sm:$0xff]  }
  0x4c   : > { %829 = vmatprep.subr.bf16.mxu1 %v2742_v3 }
  0x4d   : > { %787 = vmatpush2.bf16.msra.mxu0 %v2732_v61 }
  0x4e   : > { %788 = vmatprep.subr.bf16.mxu0 %v2734_v62 }
  0x4f   : > { %830 = vmatpush2.bf16.msra.mxu1 %v2745_v6  ;;  %v2763_v6 = vld [vmem:[%s4554_s1 + $0x204] ss:$8 sps:$4 sm:$0xff]  }
  0x50   : > { %831 = vmatprep.subr.bf16.mxu1 %v2746_v11 }
  0x51   : > { %789 = vmatpush2.bf16.msra.mxu0 %v2738_v0 }
  0x52   : > { %790 = vmatprep.subr.bf16.mxu0 %v2740_v2 }
  0x53   : > { %832 = vmatpush2.bf16.msra.mxu1 %v2751_v16 }
  0x54   : > { %833 = vmatprep.subr.bf16.mxu1 %v2752_v24 }
  0x55   : > { %791 = vmatpush2.bf16.msra.mxu0 %v2744_v4 }
  0x56   : > { %854 = vmatprep.subr.bf16.mxu0 %v2750_v12 }
  0x57   : > { %834 = vmatpush2.bf16.msra.mxu1 %v2757_v25 }
  0x8f   : > { %v2618_v5 = vpop.permute.xlu0 %2617 }
  0x90   : > { %v2620_v7 = vunpack.i.h.bf16 %v2618_v5  ;;  %v2619_v8 = vunpack.i.l.bf16 %v2618_v5  ;;  %v2758_v5 = vld [vmem:[%s4554_s1 + $0x210] ss:$8 sps:$4 sm:$0xff]  }
  0x92   : > { %v245_v9 = vsel %vm244_vm2, 0.0, %v2619_v8  ;;  %v246_v10 = vsel %vm244_vm2, 0.0, %v2620_v7  ;;  %v2761_v8 = vld [vmem:[%s4554_s1 + $0x200] ss:$8 sps:$4 sm:$0xff]  }
  0x93   : > { %v240_v13 = vpop.permute.xlu0 %239  ;;  %v249_v14 = vsel %vm248_vm3, %v245_v9, 0.0  ;;  %v250_v15 = vsel %vm248_vm3, %v246_v10, 0.0 }
  0x94   : > { %v247_v17 = vsel %vm244_vm2, 0.0, %v240_v13  ;;  %v2631_v18 = vpack.i.bf16 %v250_v15, %v249_v14  ;;  %v268_v19 = vrot.slane %v249_v14, 1  ;;  %v269_v21 = vrot.slane %v250_v15, 1 }
  0x95   : > { %v251_v20 = vsel %vm248_vm3, %v247_v17, 0.0  ;;  %v292_v28 = vrot.slane %v249_v14, 2  ;;  %v293_v29 = vrot.slane %v250_v15, 2 }
  0x96   : > { %v271_v22 = vrot.slane %v251_v20, 1  ;;  %v295_v23 = vrot.slane %v251_v20, 2  ;;  %2632 = vrot.lane.b32.xlu0 %v2631_v18, %s2778_s12  ;;  %2622 = vrot.lane.b32.xlu1 %v2631_v18, %s2779_s13  ;;  %v270_v26 = vsel %vm267_vm4, %v268_v19, %v269_v21 }
  0x97   : > { %v294_v32 = vsel %vm291_vm5, %v292_v28, %v293_v29 }
  0x98   : > { %v272_v27 = vsel %vm267_vm4, %v269_v21, %v271_v22  ;;  %v296_v31 = vsel %vm291_vm5, %v293_v29, %v295_v23 }
  0x99   : > { %v2641_v30 = vpack.i.bf16 %v272_v27, %v270_v26  ;;  %v2651_v33 = vpack.i.bf16 %v296_v31, %v294_v32 }
  0x9b   : > { %2642 = vrot.lane.b32.xlu0 %v2641_v30, %s2780_s20  ;;  %2627 = vrot.lane.b32.xlu1 %v2641_v30, %s2781_s21 }
  0x9f   : > { %2652 = vrot.lane.b32.xlu0 %v2651_v33, %s2779_s13  ;;  %2637 = vrot.lane.b32.xlu1 %v2651_v33, %s2778_s12  ;;  %s2598_s12 = sshll.u32 %s2821_s19, 5 }
  0xa0   : > { %s891_s15 = scalar_lea.vmem %s4558_s5, %s2598_s12 }
  0xa3   : > { %2647 = vrot.lane.b32.xlu1 %v2641_v30, %s2782_s22 }
 0x108   : > { %v2633_v34 = vpop.permute.xlu0 %2632  ;;  %v2623_v35 = vpop.permute.xlu1 %2622 }
 0x109   : > { %v2635_v36 = vunpack.i.h.bf16 %v2633_v34  ;;  %v2634_v37 = vunpack.i.l.bf16 %v2633_v34  ;;  %v2625_v39 = vunpack.i.h.bf16 %v2623_v35  ;;  %v2624_v40 = vunpack.i.l.bf16 %v2623_v35 }
 0x10b   : > { %v312_v43 = vsel %vm311_vm6, %v249_v14, %v2634_v37  ;;  %v313_v44 = vsel %vm311_vm6, %v250_v15, %v2635_v36 }
 0x10c   : > { %v320_v52 = vpack.c.bf16 %v313_v44, %v312_v43  ;;  %v2784_v44 = vmov 1966171168  }
 0x10d   : > { %v2628_v38 = vpop.permute.xlu1 %2627  ;;  %v2643_v54 = vpop.permute.xlu0 %2642 }
 0x10e   : > { %v2630_v41 = vunpack.i.h.bf16 %v2628_v38  ;;  %v2629_v42 = vunpack.i.l.bf16 %v2628_v38  ;;  %v2645_v61 = vunpack.i.h.bf16 %v2643_v54  ;;  %v2644_v62 = vunpack.i.l.bf16 %v2643_v54 }
 0x110   : > { %v314_v45 = vsel %vm311_vm6, %v2624_v40, %v2629_v42  ;;  %v315_v46 = vsel %vm311_vm6, %v2625_v39, %v2630_v41 }
 0x111   : > { %v2638_v47 = vpop.permute.xlu1 %2637  ;;  %v321_v48 = vpack.c.bf16 %v315_v46, %v314_v45  ;;  %v2653_v7 = vpop.permute.xlu0 %2652  ;;  %v915_v45 = vunpack.c.l.s4 %v2784_v44  ;;  %v917_v46 = vlaneseq }
 0x112   : > { %v2640_v50 = vunpack.i.h.bf16 %v2638_v47  ;;  %v2639_v51 = vunpack.i.l.bf16 %v2638_v47  ;;  %v2655_v9 = vunpack.i.h.bf16 %v2653_v7  ;;  %v2654_v10 = vunpack.i.l.bf16 %v2653_v7 }
 0x113   : > { %792 = vmatprep.mubr.bf16.mxu0 %v321_v48  ;;  %vm932_vm7 = vcmp.lt.s32.totalorder %v917_v46, 256 }
 0x114   : > { %793 = vmatmul.mubr.bf16.vlgmr.msra.gmra.mxu0 %v320_v52  ;;  %v318_v55 = vsel %vm311_vm6, %v294_v32, %v2639_v51  ;;  %v319_v56 = vsel %vm311_vm6, %v296_v31, %v2640_v50  ;;  %v324_v11 = vpack.c.bf16 %v2655_v9, %v2654_v10  ;;  %v896_v9 = vld [vmem:[#allocation2] sm:$0x3] }
 0x115   : > { %855 = vmatpush1.bf16.msra.mxu0 %v2748_v49  ;;  %v2648_v57 = vpop.permute.xlu1 %2647  ;;  %v323_v58 = vpack.c.bf16 %v319_v56, %v318_v55  ;;  %878 = vmatprep.mubr.bf16.mxu0 %v2783_v60  ;;  %v916_v55 = vunpack.c.0.s8 %v915_v45  ;;  %v918_v56 = vshrl.u32 %v917_v46, 7 }
 0x116   : > { %v2650_v63 = vunpack.i.h.bf16 %v2648_v57  ;;  %v2649_v0 = vunpack.i.l.bf16 %v2648_v57  ;;  %856 = vmatprep.subr.bf16.mxu0 %v2756_v53 }
 0x117   : > { %835 = vmatprep.mubr.bf16.mxu1 %v323_v58 }
 0x118   : > { %v316_v2 = vsel %vm311_vm6, %v2644_v62, %v2649_v0  ;;  %v317_v3 = vsel %vm311_vm6, %v2645_v61, %v2650_v63 }
 0x119   : > { %857 = vmatpush1.bf16.msra.mxu0 %v2754_v59  ;;  %v322_v4 = vpack.c.bf16 %v317_v3, %v316_v2  ;;  %v3069_v2 = vsub.s32 %v916_v55, %v918_v56 }
 0x11a   : > { %858 = vmatprep.subr.bf16.mxu0 %v2760_v1 }
 0x11b   : > { %836 = vmatmul.mubr.bf16.vlgmr.msra.gmra.mxu1 %v322_v4  ;;  %4772 = vst [vmem:[#allocation4_spill] sm:$0xff] %v3069_v2 }
 0x11d   : > { %859 = vmatpush1.bf16.msra.mxu0 %v2758_v5 }
 0x11e   : > { %860 = vmatprep.subr.bf16.mxu0 %v2763_v6 }
 0x121   : > { %861 = vmatpush1.bf16.msra.mxu0 %v2761_v8 }
 0x124   : > { %2583 = vmatmul.mubr.msk.bf16.vlgmr.msra.gmra.mxu0 %vm311_vm6, %v324_v11 }
 0x1d4   : > { %v794_v12 = vpop.f32.mrf.mxu0 }
 0x1d6   : > { %v796_v13 = vpop.f32.mrf.mxu0 }
 0x1d8   : > { %v798_v15 = vpop.f32.mrf.mxu0 }
 0x1da   : > { %v800_v17 = vpop.f32.mrf.mxu0 }
 0x1db   : > { %v837_v14 = vpop.f32.mrf.mxu1 }
 0x1dc   : > { %v838_v19 = vadd.f32 %v837_v14, %v794_v12  ;;  %v935_v12 = vld [vmem:[#allocation3] sm:$0x3] }
 0x1dd   : > { %v839_v16 = vpop.f32.mrf.mxu1 }
 0x1de   : > { %v840_v21 = vadd.f32 %v839_v16, %v796_v13 }
 0x1df   : > { %v841_v18 = vpop.f32.mrf.mxu1 }
 0x1e0   : > { %v842_v25 = vadd.f32 %v841_v18, %v798_v15 }
 0x1e1   : > { %v843_v23 = vpop.f32.mrf.mxu1 }
 0x1e2   : > { %v844_v28 = vadd.f32 %v843_v23, %v800_v17 }
 0x1e4   : > { %v880_v20 = vpop.f32.mrf.mxu0 }
 0x1e5   : > { %v881_v22 = vadd.f32 %v880_v20, %v838_v19 }
 0x1e6   : > { %v882_v24 = vpop.f32.mrf.mxu0 }
 0x1e7   : > { %892 = vst [vmem:[%s891_s15] sm:$0xff] %v881_v22  ;;  %v883_v26 = vadd.f32 %v882_v24, %v840_v21  ;;  %v936_v31 = vmul.f32 %v881_v22, %v881_v22 }
 0x1e8   : > { %v884_v27 = vpop.f32.mrf.mxu0 }
 0x1e9   : > { %893 = vst [vmem:[%s891_s15 + $0x8] sm:$0xff] %v883_v26  ;;  %v885_v29 = vadd.f32 %v884_v27, %v842_v25  ;;  %v937_v35 = vmul.f32 %v883_v26, %v883_v26 }
 0x1ea   : > { %v886_v30 = vpop.f32.mrf.mxu0 }
 0x1eb   : > { %894 = vst [vmem:[%s891_s15 + $0x10] sm:$0xff] %v885_v29  ;;  %v897_v32 = vadd.f32 %v885_v29, %v881_v22  ;;  %v938_v33 = vmul.f32 %v885_v29, %v885_v29  ;;  %v887_v34 = vadd.f32 %v886_v30, %v844_v28 }
 0x1ed   : > { %v898_v36 = vrot.slane %v897_v32, 4  ;;  %v940_v37 = vadd.f32 %v938_v33, %v936_v31  ;;  %895 = vst [vmem:[%s891_s15 + $0x18] sm:$0xff] %v887_v34  ;;  %v904_v38 = vadd.f32 %v887_v34, %v883_v26  ;;  %v939_v39 = vmul.f32 %v887_v34, %v887_v34 }
 0x1ef   : > { %v899_v40 = vadd.f32 %v898_v36, %v897_v32  ;;  %v941_v41 = vrot.slane %v940_v37, 4  ;;  %v905_v42 = vrot.slane %v904_v38, 4  ;;  %v947_v43 = vadd.f32 %v939_v39, %v937_v35 }
 0x1f1   : > { %v900_v47 = vrot.slane %v899_v40, 2  ;;  %v942_v48 = vadd.f32 %v941_v41, %v940_v37  ;;  %v906_v49 = vadd.f32 %v905_v42, %v904_v38  ;;  %v948_v50 = vrot.slane %v947_v43, 4 }
 0x1f3   : > { %v901_v51 = vadd.f32 %v900_v47, %v899_v40  ;;  %v943_v52 = vrot.slane %v942_v48, 2  ;;  %v907_v53 = vrot.slane %v906_v49, 2  ;;  %v949_v54 = vadd.f32 %v948_v50, %v947_v43 }
 0x1f5   : > { %v902_v57 = vrot.slane %v901_v51, 1  ;;  %v944_v58 = vadd.f32 %v943_v52, %v942_v48  ;;  %v908_v59 = vadd.f32 %v907_v53, %v906_v49  ;;  %v950_v60 = vrot.slane %v949_v54, 2 }
 0x1f7   : > { %v945_v61 = vrot.slane %v944_v58, 1  ;;  %v909_v62 = vrot.slane %v908_v59, 1  ;;  %v951_v63 = vadd.f32 %v950_v60, %v949_v54  ;;  %v903_v0 = vadd.f32 %v902_v57, %v901_v51 }
 0x1f9   : > { %v910_v1 = vadd.f32 %v909_v62, %v908_v59  ;;  %v952_v3 = vrot.slane %v951_v63, 1  ;;  %v946_v4 = vadd.f32 %v945_v61, %v944_v58 }
 0x1fb   : > { %v913_v5 = vcombine.low %v903_v0, %v910_v1  ;;  %v953_v6 = vadd.f32 %v952_v3, %v951_v63 }
 0x1fd   : > { %v920_v7 = vrot.slane %v913_v5, %v3069_v2  ;;  %v956_v8 = vcombine.low %v946_v4, %v953_v6 }
 0x1ff   : > { %v927_v10 = vrot.slane %v920_v7, %v3069_v2  ;;  %v963_v11 = vrot.slane %v956_v8, %v3069_v2 }
 0x201   : > { %v929_v13 = vadd.f32 %v927_v10, %v896_v9  ;;  %v970_v14 = vrot.slane %v963_v11, %v3069_v2  ;;  %977 = sbr.rel (%p2586_p5) target bundleno = 1001 (0x3e9), region = 48 }
 0x203   : > { %934 = vst.msk [vmem:[#allocation2] sm:$0x3] %vm932_vm7, %v929_v13  ;;  %v972_v15 = vadd.f32 %v970_v14, %v935_v12 }
 0x205   : > { %973 = vst.msk [vmem:[#allocation3] sm:$0x3] %vm932_vm7, %v972_v15 }
 0x206   : > { %v1035_v16 = vld [vmem:[%s4555_s2 + $0xf8] sm:$0xff]  ;;  %v1034_v17 = vld [vmem:[%s4555_s2 + $0xf0] sm:$0xff]  ;;  %v1033_v18 = vld [vmem:[%s4555_s2 + $0xe8] sm:$0xff]  ;;  %v3085_v19 = vsub.s32 0, %v918_v56  ;;  %v3087_v20 = vsub.s32 1, %v918_v56 }
 0x207   : > { %v3089_v21 = vand.u32 4294901760, %v1035_v16  ;;  %v3091_v22 = vand.u32 4294901760, %v1034_v17  ;;  %v3093_v23 = vand.u32 4294901760, %v1033_v18  ;;  %v1032_v24 = vld [vmem:[%s4555_s2 + $0xe0] sm:$0xff]  ;;  %v1031_v25 = vld [vmem:[%s4555_s2 + $0xd8] sm:$0xff]  ;;  %v1030_v26 = vld [vmem:[%s4555_s2 + $0xd0] sm:$0xff] }
 0x208   : > { %4773 = vst [vmem:[#allocation5_spill] sm:$0xff] %v3085_v19  ;;  %4774 = vst [vmem:[#allocation6_spill] sm:$0xff] %v3087_v20  ;;  %v3104_v27 = vand.u32 4294901760, %v1032_v24  ;;  %v3106_v28 = vand.u32 4294901760, %v1031_v25  ;;  %v3108_v29 = vand.u32 4294901760, %v1030_v26  ;;  %v1029_v30 = vld [vmem:[%s4555_s2 + $0xc8] sm:$0xff] }
 0x209   : > { %v1028_v31 = vld [vmem:[%s4555_s2 + $0xc0] sm:$0xff]  ;;  %v1027_v32 = vld [vmem:[%s4555_s2 + $0xb8] sm:$0xff]  ;;  %1069 = vmatprep.subr.mxu0 %v3089_v21  ;;  %v3120_v33 = vand.u32 4294901760, %v1029_v30  ;;  %v3127_v36 = vsub.f32 %v1035_v16, %v3089_v21  ;;  %v3132_v37 = vld [vmem:[%s4555_s2 + $0xb0] sm:$0xff]  ;;  %v3149_v41 = vsub.f32 %v1034_v17, %v3091_v22  ;;  %v3155_v43 = vsub.f32 %v1033_v18, %v3093_v23 }
 0x20a   : > { %v3122_v34 = vand.u32 4294901760, %v1028_v31  ;;  %v3124_v35 = vand.u32 4294901760, %v1027_v32  ;;  %v3137_v38 = vld [vmem:[%s4555_s2 + $0xa8] sm:$0xff]  ;;  %v3142_v39 = vld [vmem:[%s4555_s2 + $0xa0] sm:$0xff]  ;;  %1071 = vmatpush1.msra.mxu0 %v3091_v22  ;;  %v3146_v40 = vand.u32 4294901760, %v3132_v37  ;;  %v3160_v44 = vld [vmem:[%s4555_s2 + $0x98] sm:$0xff]  ;;  %v3178_v49 = vsub.f32 %v1032_v24, %v3104_v27 }
 0x20b   : > { %v3152_v42 = vand.u32 4294901760, %v3137_v38  ;;  %v3165_v45 = vld [vmem:[%s4555_s2 + $0x90] sm:$0xff]  ;;  %v3170_v46 = vld [vmem:[%s4555_s2 + $0x88] sm:$0xff]  ;;  %1073 = vmatprep.subr.mxu0 %v3093_v23  ;;  %v4571_v47 = vand.u32 4294901760, %v3127_v36  ;;  %v3175_v48 = vand.u32 4294901760, %v3142_v39  ;;  %v3181_v50 = vand.u32 4294901760, %v3160_v44 }
 0x20c   : > { %1075 = vmatpush1.msra.mxu0 %v3104_v27  ;;  %v4569_v51 = vand.u32 4294901760, %v3149_v41  ;;  %v4567_v52 = vand.u32 4294901760, %v3155_v43  ;;  %v3187_v53 = vsub.f32 %v1031_v25, %v3106_v28  ;;  %v3190_v54 = vand.u32 4294901760, %v3165_v45  ;;  %v3195_v55 = vld [vmem:[%s4555_s2 + $0x80] sm:$0xff]  ;;  %v3222_v0 = vld [vmem:[%s4555_s2 + $0x78] sm:$0xff]  ;;  %v3235_v6 = vld [vmem:[%s4555_s2 + $0x70] sm:$0xff] }
 0x20d   : > { %4775 = vst [vmem:[#allocation7_spill] sm:$0xff] %v3175_v48  ;;  %4776 = vst [vmem:[#allocation8_spill] sm:$0xff] %v3181_v50  ;;  %1077 = vmatprep.subr.mxu0 %v3106_v28  ;;  %v1216_v56 = vsub.f32 %v3127_v36, %v4571_v47  ;;  %v4566_v57 = vand.u32 4294901760, %v3178_v49  ;;  %v3203_v58 = vsub.f32 %v1030_v26, %v3108_v29  ;;  %v3206_v59 = vand.u32 4294901760, %v3170_v46  ;;  %v3245_v11 = vld [vmem:[%s4555_s2 + $0x68] sm:$0xff]  ;;  %v3260_v16 = vld [vmem:[%s4555_s2 + $0x60] sm:$0xff] }
 0x20e   : > { %4777 = vst [vmem:[#allocation9_spill] sm:$0xff] %v3190_v54  ;;  %1079 = vmatpush1.msra.mxu0 %v3108_v29  ;;  %v1222_v60 = vsub.f32 %v3149_v41, %v4569_v51  ;;  %v1228_v61 = vsub.f32 %v3155_v43, %v4567_v52  ;;  %v4564_v62 = vand.u32 4294901760, %v3187_v53  ;;  %v3217_v63 = vsub.f32 %v1029_v30, %v3120_v33  ;;  %v3275_v26 = vld [vmem:[%s4555_s2 + $0x58] sm:$0xff]  ;;  %v3368_v52 = vld [vmem:[%s4555_s2 + $0x30] sm:$0xff]  ;;  %v3384_v51 = vld [vmem:[%s4555_s2 + $0x28] sm:$0xff] }
 0x20f   : > { %4778 = vst [vmem:[#allocation10_spill] sm:$0xff] %v3206_v59  ;;  %1081 = vmatprep.subr.mxu0 %v3120_v33  ;;  %v1217_v1 = vand.u32 4294901760, %v1216_v56  ;;  %v1234_v3 = vsub.f32 %v3178_v49, %v4566_v57  ;;  %v4562_v4 = vand.u32 4294901760, %v3203_v58  ;;  %v3230_v5 = vand.u32 4294901760, %v3195_v55 }
 0x210   : > { %1083 = vmatpush1.msra.mxu0 %v3122_v34  ;;  %v1223_v7 = vand.u32 4294901760, %v1222_v60  ;;  %v1229_v8 = vand.u32 4294901760, %v1228_v61  ;;  %v1240_v9 = vsub.f32 %v3187_v53, %v4564_v62  ;;  %v4560_v10 = vand.u32 4294901760, %v3217_v63  ;;  %v3289_v60 = vld [vmem:[%s4555_s2 + $0x50] sm:$0xff] }
 0x211   : > { %4779 = vst [vmem:[#allocation11_spill] sm:$0xff] %v3230_v5  ;;  %1085 = vmatprep.subr.mxu0 %v3124_v35  ;;  %1218 = vmatprep.subr.mxu1 %v1217_v1  ;;  %v1235_v12 = vand.u32 4294901760, %v1234_v3  ;;  %v1246_v13 = vsub.f32 %v3203_v58, %v4562_v4  ;;  %v3252_v14 = vsub.f32 %v1028_v31, %v3122_v34  ;;  %v3255_v15 = vand.u32 4294901760, %v3222_v0 }
 0x212   : > { %1087 = vmatpush1.msra.mxu0 %v3146_v40  ;;  %1224 = vmatpush1.msra.mxu1 %v1223_v7  ;;  %v1241_v17 = vand.u32 4294901760, %v1240_v9  ;;  %v1252_v18 = vsub.f32 %v3217_v63, %v4560_v10  ;;  %v3267_v24 = vsub.f32 %v1027_v32, %v3124_v35  ;;  %v3270_v25 = vand.u32 4294901760, %v3235_v6 }
 0x213   : > { %4780 = vst [vmem:[#allocation12_spill] sm:$0xff] %v3255_v15  ;;  %1089 = vmatprep.subr.mxu0 %v3152_v42  ;;  %1230 = vmatprep.subr.mxu1 %v1229_v8  ;;  %v1247_v30 = vand.u32 4294901760, %v1246_v13  ;;  %v4559_v31 = vand.u32 4294901760, %v3252_v14  ;;  %v3281_v56 = vsub.f32 %v3132_v37, %v3146_v40  ;;  %v3284_v32 = vand.u32 4294901760, %v3245_v11 }
 0x214   : > { %4781 = vst [vmem:[#allocation13_spill] sm:$0xff] %v3270_v25  ;;  %1091 = vmatpush1.msra.mxu0 %v3175_v48  ;;  %1236 = vmatpush1.msra.mxu1 %v1235_v12  ;;  %v1253_v61 = vand.u32 4294901760, %v1252_v18  ;;  %v4561_v1 = vand.u32 4294901760, %v3267_v24  ;;  %v3295_v3 = vsub.f32 %v3137_v38, %v3152_v42  ;;  %v3298_v37 = vand.u32 4294901760, %v3260_v16  ;;  %v3315_v38 = vld [vmem:[%s4555_s2 + $0x48] sm:$0xff] }
 0x215   : > { %4782 = vst [vmem:[#allocation14_spill] sm:$0xff] %v3284_v32  ;;  %1093 = vmatprep.subr.mxu0 %v3181_v50  ;;  %1242 = vmatprep.subr.mxu1 %v1241_v17  ;;  %v1258_v7 = vsub.f32 %v3252_v14, %v4559_v31  ;;  %v4563_v8 = vand.u32 4294901760, %v3281_v56  ;;  %v3307_v9 = vsub.f32 %v3142_v39, %v3175_v48  ;;  %v3310_v12 = vand.u32 4294901760, %v3275_v26 }
 0x216   : > { %4783 = vst [vmem:[#allocation15_spill] sm:$0xff] %v3298_v37  ;;  %1095 = vmatpush1.msra.mxu0 %v3190_v54  ;;  %1248 = vmatpush1.msra.mxu1 %v1247_v30  ;;  %v1264_v13 = vsub.f32 %v3267_v24, %v4561_v1  ;;  %v4565_v17 = vand.u32 4294901760, %v3295_v3  ;;  %v3324_v39 = vsub.f32 %v3160_v44, %v3181_v50  ;;  %v3327_v18 = vand.u32 4294901760, %v3289_v60  ;;  %v3341_v44 = vld [vmem:[%s4555_s2 + $0x40] sm:$0xff]  ;;  %v3506_v50 = vld [vmem:[%s4555_s2 + $0x1f0] sm:$0xff] }
 0x217   : > { %4784 = vst [vmem:[#allocation16_spill] sm:$0xff] %v3310_v12  ;;  %1097 = vmatprep.subr.mxu0 %v3206_v59  ;;  %1254 = vmatprep.subr.mxu1 %v1253_v61  ;;  %v1259_v31 = vand.u32 4294901760, %v1258_v7  ;;  %v1270_v30 = vsub.f32 %v3281_v56, %v4563_v8  ;;  %v4568_v10 = vand.u32 4294901760, %v3307_v9  ;;  %v3336_v1 = vsub.f32 %v3165_v45, %v3190_v54  ;;  %v3354_v45 = vld [vmem:[%s4555_s2 + $0x38] sm:$0xff] }
 0x218   : > { %4785 = vst [vmem:[#allocation17_spill] sm:$0xff] %v3327_v18  ;;  %1099 = vmatpush1.msra.mxu0 %v3230_v5  ;;  %v1265_v4 = vand.u32 4294901760, %v1264_v13  ;;  %v1276_v61 = vsub.f32 %v3295_v3, %v4565_v17  ;;  %v4570_v7 = vand.u32 4294901760, %v3324_v39  ;;  %v3349_v8 = vand.u32 4294901760, %v3315_v38 }
 0x219   : > { %1260 = vmatpush1.msra.mxu1 %v1259_v31  ;;  %1101 = vmatprep.subr.mxu0 %v3255_v15  ;;  %v1271_v62 = vand.u32 4294901760, %v1270_v30  ;;  %v1282_v13 = vsub.f32 %v3307_v9, %v4568_v10  ;;  %v4574_v17 = vand.u32 4294901760, %v3336_v1  ;;  %v3363_v57 = vsub.f32 %v3170_v46, %v3206_v59 }
 0x21a   : > { %4786 = vst [vmem:[#allocation18_spill] sm:$0xff] %v3349_v8  ;;  %1266 = vmatprep.subr.mxu1 %v1265_v4  ;;  %1103 = vmatpush1.msra.mxu0 %v3270_v25  ;;  %v1277_v31 = vand.u32 4294901760, %v1276_v61  ;;  %v1288_v30 = vsub.f32 %v3324_v39, %v4570_v7  ;;  %v3375_v10 = vand.u32 4294901760, %v3341_v44  ;;  %v3379_v46 = vsub.f32 %v3195_v55, %v3230_v5  ;;  %v3397_v55 = vld [vmem:[%s4555_s2 + $0x20] sm:$0xff]  ;;  %v3411_v7 = vld [vmem:[%s4555_s2 + $0x18] sm:$0xff] }
 0x21b   : > { %1272 = vmatpush1.msra.mxu1 %v1271_v62  ;;  %1105 = vmatprep.subr.mxu0 %v3284_v32  ;;  %v1283_v4 = vand.u32 4294901760, %v1282_v13  ;;  %v1294_v61 = vsub.f32 %v3336_v1, %v4574_v17  ;;  %v3392_v47 = vand.u32 4294901760, %v3354_v45  ;;  %v3403_v2 = vsub.f32 %v3222_v0, %v3255_v15 }
 0x21c   : > { %4787 = vst [vmem:[#allocation19_spill] sm:$0xff] %v3375_v10  ;;  %1278 = vmatprep.subr.mxu1 %v1277_v31  ;;  %1107 = vmatpush1.msra.mxu0 %v3298_v37  ;;  %v1289_v62 = vand.u32 4294901760, %v1288_v30  ;;  %v3406_v17 = vand.u32 4294901760, %v3368_v52  ;;  %v4791_v30 = vand.u32 4294901760, %v3363_v57  ;;  %v3419_v0 = vsub.f32 %v3235_v6, %v3270_v25  ;;  %v3439_v6 = vld [vmem:[%s4555_s2 + $0x10] sm:$0xff] }
 0x21d   : > { %4788 = vst [vmem:[#allocation20_spill] sm:$0xff] %v3392_v47  ;;  %4789 = vst [vmem:[#allocation21_spill] sm:$0xff] %v3403_v2  ;;  %1284 = vmatpush1.msra.mxu1 %v1283_v4  ;;  %1109 = vmatprep.subr.mxu0 %v3310_v12  ;;  %v1295_v31 = vand.u32 4294901760, %v1294_v61  ;;  %v3422_v15 = vand.u32 4294901760, %v3384_v51  ;;  %v4794_v5 = vand.u32 4294901760, %v3379_v46  ;;  %v3431_v59 = vsub.f32 %v3245_v11, %v3284_v32  ;;  %v3453_v32 = vld [vmem:[%s4555_s2 + $0x8] sm:$0xff] }
 0x21e   : > { %4790 = vst [vmem:[#allocation22_spill] sm:$0xff] %v3406_v17  ;;  %v1300_v13 = vsub.f32 %v3363_v57, %v4791_v30  ;;  %4792 = vst [vmem:[#allocation23_spill] sm:$0xff] %v3419_v0  ;;  %1290 = vmatprep.subr.mxu1 %v1289_v62  ;;  %1111 = vmatpush1.msra.mxu0 %v3327_v18  ;;  %v3434_v30 = vand.u32 4294901760, %v3397_v55  ;;  %v3445_v61 = vsub.f32 %v3260_v16, %v3298_v37 }
 0x21f   : > { %4793 = vst [vmem:[#allocation24_spill] sm:$0xff] %v3422_v15  ;;  %v1306_v4 = vsub.f32 %v3379_v46, %v4794_v5  ;;  %4795 = vst [vmem:[#allocation25_spill] sm:$0xff] %v3431_v59  ;;  %1296 = vmatpush1.msra.mxu1 %v1295_v31  ;;  %1113 = vmatprep.subr.mxu0 %v3349_v8  ;;  %v3448_v11 = vand.u32 4294901760, %v3411_v7  ;;  %v4799_v25 = vand.u32 4294901760, %v3403_v2  ;;  %v4597_v5 = vand.u32 4294901760, %v3431_v59 }
 0x220   : > { %4796 = vst [vmem:[#allocation26_spill] sm:$0xff] %v3434_v30  ;;  %v1301_v62 = vand.u32 4294901760, %v1300_v13  ;;  %4797 = vst [vmem:[#allocation27_spill] sm:$0xff] %v3445_v61  ;;  %1115 = vmatpush1.msra.mxu0 %v3375_v10  ;;  %v3462_v16 = vsub.f32 %v3275_v26, %v3310_v12  ;;  %v4801_v37 = vand.u32 4294901760, %v3419_v0  ;;  %v3479_v26 = vld [vmem:[%s4555_s2] sm:$0xff]  ;;  %v3487_v12 = vand.u32 4294901760, %v3453_v32 }
 0x221   : > { %4798 = vst [vmem:[#allocation28_spill] sm:$0xff] %v3448_v11  ;;  %v1307_v31 = vand.u32 4294901760, %v1306_v4  ;;  %v1312_v13 = vsub.f32 %v3403_v2, %v4799_v25  ;;  %1117 = vmatprep.subr.mxu0 %v3392_v47  ;;  %v3470_v4 = vand.u32 4294901760, %v3439_v6  ;;  %v3474_v25 = vsub.f32 %v3289_v60, %v3327_v18  ;;  %v3492_v60 = vld [vmem:[%s4555_s2 + $0x1f8] sm:$0xff] }
 0x222   : > { %4800 = vst [vmem:[#allocation29_spill] sm:$0xff] %v3462_v16  ;;  %1302 = vmatprep.subr.mxu1 %v1301_v62  ;;  %v1318_v54 = vsub.f32 %v3419_v0, %v4801_v37  ;;  %1119 = vmatpush1.msra.mxu0 %v3406_v17  ;;  %v1324_v37 = vsub.f32 %v3431_v59, %v4597_v5  ;;  %4804 = vst [vmem:[#allocation32_spill] sm:$0xff] %v3487_v12  ;;  %v3522_v0 = vld [vmem:[%s4555_s2 + $0x1e8] sm:$0xff] }
 0x223   : > { %4802 = vst [vmem:[#allocation30_spill] sm:$0xff] %v3470_v4  ;;  %4803 = vst [vmem:[#allocation31_spill] sm:$0xff] %v3474_v25  ;;  %1308 = vmatpush1.msra.mxu1 %v1307_v31  ;;  %v1313_v62 = vand.u32 4294901760, %v1312_v13  ;;  %1121 = vmatprep.subr.mxu0 %v3422_v15  ;;  %v4805_v31 = vand.u32 4294901760, %v3445_v61  ;;  %v3501_v5 = vsub.f32 %v3315_v38, %v3349_v8  ;;  %v3549_v8 = vld [vmem:[%s4555_s2 + $0x1d8] sm:$0xff] }
 0x224   : > { %v1319_v18 = vand.u32 4294901760, %v1318_v54  ;;  %v1325_v59 = vand.u32 4294901760, %v1324_v37  ;;  %1123 = vmatpush1.msra.mxu0 %v3434_v30  ;;  %v4807_v54 = vand.u32 4294901760, %v3462_v16  ;;  %v3517_v38 = vsub.f32 %v3341_v44, %v3375_v10  ;;  %v3535_v44 = vld [vmem:[%s4555_s2 + $0x1e0] sm:$0xff] }
 0x225   : > { %v1330_v13 = vsub.f32 %v3445_v61, %v4805_v31  ;;  %4806 = vst [vmem:[#allocation33_spill] sm:$0xff] %v3501_v5  ;;  %1314 = vmatprep.subr.mxu1 %v1313_v62  ;;  %v3513_v31 = vand.u32 4294901760, %v3479_v26  ;;  %1125 = vmatprep.subr.mxu0 %v3448_v11  ;;  %v4810_v37 = vand.u32 4294901760, %v3474_v25  ;;  %v3569_v61 = vsub.f32 %v3384_v51, %v3422_v15  ;;  %v3591_v15 = vld [vmem:[%s4555_s2 + $0x1c8] sm:$0xff] }
 0x226   : > { %v1336_v48 = vsub.f32 %v3462_v16, %v4807_v54  ;;  %4809 = vst [vmem:[#allocation35_spill] sm:$0xff] %v3517_v38  ;;  %1320 = vmatpush1.msra.mxu1 %v1319_v18  ;;  %v3530_v16 = vand.u32 4294901760, %v3492_v60  ;;  %1127 = vmatpush1.msra.mxu0 %v3470_v4  ;;  %v3560_v18 = vand.u32 4294901760, %v3522_v0  ;;  %v3586_v51 = vand.u32 4294901760, %v3549_v8 }
 0x227   : > { %4808 = vst [vmem:[#allocation34_spill] sm:$0xff] %v3513_v31  ;;  %v1331_v62 = vand.u32 4294901760, %v1330_v13  ;;  %v1342_v54 = vsub.f32 %v3474_v25, %v4810_v37  ;;  %1326 = vmatprep.subr.mxu1 %v1325_v59  ;;  %v3541_v13 = vsub.f32 %v3354_v45, %v3392_v47  ;;  %v3544_v37 = vand.u32 4294901760, %v3506_v50  ;;  %1129 = vmatprep.subr.mxu0 %v3487_v12 }
 0x228   : > { %4811 = vst [vmem:[#allocation36_spill] sm:$0xff] %v3530_v16  ;;  %v1337_v10 = vand.u32 4294901760, %v1336_v48  ;;  %v4814_v48 = vand.u32 4294901760, %v3501_v5  ;;  %v3557_v45 = vsub.f32 %v3368_v52, %v3406_v17  ;;  %4816 = vst [vmem:[#allocation40_spill] sm:$0xff] %v3560_v18  ;;  %1131 = vmatpush1.msra.mxu0 %v3513_v31  ;;  %v4817_v47 = vand.u32 4294901760, %v3517_v38  ;;  %v3577_v52 = vld [vmem:[%s4555_s2 + $0x1d0] sm:$0xff] }
 0x229   : > { %4812 = vst [vmem:[#allocation37_spill] sm:$0xff] %v3541_v13  ;;  %4813 = vst [vmem:[#allocation38_spill] sm:$0xff] %v3544_v37  ;;  %1332 = vmatpush1.msra.mxu1 %v1331_v62  ;;  %v1343_v25 = vand.u32 4294901760, %v1342_v54  ;;  %1133 = vmatprep.subr.mxu0 %v3530_v16  ;;  %v3583_v54 = vsub.f32 %v3397_v55, %v3434_v30  ;;  %v3600_v55 = vsub.f32 %v3411_v7, %v3448_v11  ;;  %v3617_v7 = vld [vmem:[%s4555_s2 + $0x1c0] sm:$0xff] }
 0x22a   : > { %v1348_v59 = vsub.f32 %v3501_v5, %v4814_v48  ;;  %4815 = vst [vmem:[#allocation39_spill] sm:$0xff] %v3557_v45  ;;  %1338 = vmatprep.subr.mxu1 %v1337_v10  ;;  %v1354_v62 = vsub.f32 %v3517_v38, %v4817_v47  ;;  %4818 = vst [vmem:[#allocation41_spill] sm:$0xff] %v3569_v61  ;;  %v3572_v48 = vand.u32 4294901760, %v3535_v44  ;;  %1135 = vmatpush2.msra.mxu0 %v3544_v37 }
 0x22b   : > { %1344 = vmatpush1.msra.mxu1 %v1343_v25  ;;  %4820 = vst [vmem:[#allocation43_spill] sm:$0xff] %v3583_v54  ;;  %4821 = vst [vmem:[#allocation44_spill] sm:$0xff] %v3586_v51  ;;  %v4822_v25 = vand.u32 4294901760, %v3541_v13  ;;  %v4628_v47 = vand.u32 4294901760, %v3569_v61  ;;  %v4824_v30 = vand.u32 4294901760, %v3557_v45  ;;  %1137 = vmatprep.subr.mxu0 %v3560_v18  ;;  %v3608_v5 = vand.u32 4294901760, %v3577_v52 }
 0x22c   : > { %4819 = vst [vmem:[#allocation42_spill] sm:$0xff] %v3572_v48  ;;  %v1349_v10 = vand.u32 4294901760, %v1348_v59  ;;  %v1355_v17 = vand.u32 4294901760, %v1354_v62  ;;  %4823 = vst [vmem:[#allocation45_spill] sm:$0xff] %v3600_v55  ;;  %1139 = vmatpush2.msra.mxu0 %v3572_v48  ;;  %v3625_v11 = vand.u32 4294901760, %v3591_v15  ;;  %v3639_v62 = vsub.f32 %v3453_v32, %v3487_v12  ;;  %v3687_v12 = vld [vmem:[%s4555_s2 + $0x198] sm:$0xff] }
 0x22d   : > { %v1360_v59 = vsub.f32 %v3541_v13, %v4822_v25  ;;  %v1366_v38 = vsub.f32 %v3557_v45, %v4824_v30  ;;  %4825 = vst [vmem:[#allocation46_spill] sm:$0xff] %v3608_v5  ;;  %v3612_v25 = vsub.f32 %v3439_v6, %v3470_v4  ;;  %v1372_v30 = vsub.f32 %v3569_v61, %v4628_v47  ;;  %v3630_v6 = vld [vmem:[%s4555_s2 + $0x1b8] sm:$0xff]  ;;  %v3644_v61 = vld [vmem:[%s4555_s2 + $0x1b0] sm:$0xff]  ;;  %v3660_v47 = vld [vmem:[%s4555_s2 + $0x1a8] sm:$0xff] }
 0x22e   : > { %1350 = vmatprep.subr.mxu1 %v1349_v10  ;;  %4827 = vst [vmem:[#allocation48_spill] sm:$0xff] %v3625_v11  ;;  %1141 = vmatprep.subr.mxu0 %v3586_v51  ;;  %4829 = vst [vmem:[#allocation49_spill] sm:$0xff] %v3639_v62  ;;  %v3655_v32 = vsub.f32 %v3479_v26, %v3513_v31  ;;  %v3673_v26 = vld [vmem:[%s4555_s2 + $0x1a0] sm:$0xff] }
 0x22f   : > { %4826 = vst [vmem:[#allocation47_spill] sm:$0xff] %v3612_v25  ;;  %1356 = vmatpush1.msra.mxu1 %v1355_v17  ;;  %v1361_v10 = vand.u32 4294901760, %v1360_v59  ;;  %v1367_v4 = vand.u32 4294901760, %v1366_v38  ;;  %v4828_v17 = vand.u32 4294901760, %v3583_v54  ;;  %v1373_v45 = vand.u32 4294901760, %v1372_v30  ;;  %1143 = vmatpush2.msra.mxu0 %v3608_v5 }
 0x230   : > { %v4830_v38 = vand.u32 4294901760, %v3600_v55  ;;  %4832 = vst [vmem:[#allocation51_spill] sm:$0xff] %v3655_v32  ;;  %v4833_v30 = vand.u32 4294901760, %v3612_v25  ;;  %1145 = vmatprep.subr.mxu0 %v3625_v11 }
 0x231   : > { %v1378_v59 = vsub.f32 %v3583_v54, %v4828_v17  ;;  %1362 = vmatprep.subr.mxu1 %v1361_v10  ;;  %v3651_v17 = vand.u32 4294901760, %v3617_v7 }
 0x232   : > { %v1384_v13 = vsub.f32 %v3600_v55, %v4830_v38  ;;  %1368 = vmatpush1.msra.mxu1 %v1367_v4  ;;  %v1390_v38 = vsub.f32 %v3612_v25, %v4833_v30  ;;  %v3668_v55 = vand.u32 4294901760, %v3630_v6  ;;  %v3682_v30 = vand.u32 4294901760, %v3644_v61 }
 0x233   : > { %4831 = vst [vmem:[#allocation50_spill] sm:$0xff] %v3651_v17  ;;  %v1379_v10 = vand.u32 4294901760, %v1378_v59  ;;  %1374 = vmatprep.subr.mxu1 %v1373_v45  ;;  %1147 = vmatpush2.msra.mxu0 %v3651_v17  ;;  %v3679_v59 = vsub.f32 %v3492_v60, %v3530_v16  ;;  %v3695_v60 = vsub.f32 %v3506_v50, %v3544_v37  ;;  %v3698_v4 = vand.u32 4294901760, %v3660_v47  ;;  %v3715_v50 = vld [vmem:[%s4555_s2 + $0x190] sm:$0xff] }
 0x234   : > { %4834 = vst [vmem:[#allocation52_spill] sm:$0xff] %v3668_v55  ;;  %v1385_v31 = vand.u32 4294901760, %v1384_v13  ;;  %4836 = vst [vmem:[#allocation54_spill] sm:$0xff] %v3682_v30  ;;  %v1391_v25 = vand.u32 4294901760, %v1390_v38  ;;  %v4837_v13 = vand.u32 4294901760, %v3639_v62  ;;  %1149 = vmatprep.subr.mxu0 %v3668_v55  ;;  %v4840_v16 = vand.u32 4294901760, %v3655_v32 }
 0x235   : > { %4835 = vst [vmem:[#allocation53_spill] sm:$0xff] %v3679_v59  ;;  %1380 = vmatpush1.msra.mxu1 %v1379_v10  ;;  %4838 = vst [vmem:[#allocation55_spill] sm:$0xff] %v3695_v60  ;;  %1151 = vmatpush2.msra.mxu0 %v3682_v30  ;;  %v3707_v38 = vsub.f32 %v3522_v0, %v3560_v18  ;;  %v3721_v10 = vsub.f32 %v3535_v44, %v3572_v48  ;;  %v3724_v0 = vand.u32 4294901760, %v3687_v12  ;;  %v3729_v18 = vld [vmem:[%s4555_s2 + $0x188] sm:$0xff] }
 0x236   : > { %v1396_v45 = vsub.f32 %v3639_v62, %v4837_v13  ;;  %4839 = vst [vmem:[#allocation56_spill] sm:$0xff] %v3698_v4  ;;  %1386 = vmatprep.subr.mxu1 %v1385_v31  ;;  %v1402_v54 = vsub.f32 %v3655_v32, %v4840_v16  ;;  %v3710_v13 = vand.u32 4294901760, %v3673_v26  ;;  %1153 = vmatprep.subr.mxu0 %v3698_v4  ;;  %v4847_v48 = vand.u32 4294901760, %v3695_v60  ;;  %v3781_v62 = vld [vmem:[%s4555_s2 + $0x170] sm:$0xff] }
 0x237   : > { %4841 = vst [vmem:[#allocation57_spill] sm:$0xff] %v3707_v38  ;;  %1392 = vmatpush1.msra.mxu1 %v1391_v25  ;;  %4843 = vst [vmem:[#allocation59_spill] sm:$0xff] %v3721_v10  ;;  %v4845_v25 = vand.u32 4294901760, %v3679_v59  ;;  %v4663_v16 = vand.u32 4294901760, %v3707_v38  ;;  %v3738_v44 = vsub.f32 %v3549_v8, %v3586_v51  ;;  %v3755_v8 = vld [vmem:[%s4555_s2 + $0x180] sm:$0xff]  ;;  %v3762_v51 = vand.u32 4294901760, %v3729_v18 }
 0x238   : > { %4842 = vst [vmem:[#allocation58_spill] sm:$0xff] %v3710_v13  ;;  %v1397_v31 = vand.u32 4294901760, %v1396_v45  ;;  %4844 = vst [vmem:[#allocation60_spill] sm:$0xff] %v3724_v0  ;;  %v1403_v37 = vand.u32 4294901760, %v1402_v54  ;;  %1155 = vmatpush2.msra.mxu0 %v3710_v13  ;;  %v1414_v32 = vsub.f32 %v3695_v60, %v4847_v48  ;;  %v3746_v54 = vand.u32 4294901760, %v3715_v50 }
 0x239   : > { %v1408_v45 = vsub.f32 %v3679_v59, %v4845_v25  ;;  %4846 = vst [vmem:[#allocation61_spill] sm:$0xff] %v3738_v44  ;;  %1157 = vmatprep.subr.mxu0 %v3724_v0  ;;  %v3750_v25 = vsub.f32 %v3577_v52, %v3608_v5  ;;  %v1420_v48 = vsub.f32 %v3707_v38, %v4663_v16  ;;  %4850 = vst [vmem:[#allocation64_spill] sm:$0xff] %v3762_v51  ;;  %v3767_v52 = vld [vmem:[%s4555_s2 + $0x178] sm:$0xff] }
 0x23a   : > { %1398 = vmatprep.subr.mxu1 %v1397_v31  ;;  %4848 = vst [vmem:[#allocation62_spill] sm:$0xff] %v3746_v54  ;;  %v1415_v5 = vand.u32 4294901760, %v1414_v32  ;;  %v4851_v60 = vand.u32 4294901760, %v3721_v10  ;;  %1159 = vmatpush2.msra.mxu0 %v3746_v54  ;;  %v3776_v16 = vsub.f32 %v3591_v15, %v3625_v11  ;;  %v4853_v32 = vand.u32 4294901760, %v3738_v44  ;;  %v3823_v11 = vld [vmem:[%s4555_s2 + $0x158] sm:$0xff] }
 0x23b   : > { %4849 = vst [vmem:[#allocation63_spill] sm:$0xff] %v3750_v25  ;;  %1404 = vmatpush1.msra.mxu1 %v1403_v37  ;;  %v1409_v31 = vand.u32 4294901760, %v1408_v45  ;;  %v1421_v38 = vand.u32 4294901760, %v1420_v48  ;;  %1161 = vmatprep.subr.mxu0 %v3762_v51  ;;  %v3792_v15 = vsub.f32 %v3617_v7, %v3651_v17  ;;  %v3797_v45 = vld [vmem:[%s4555_s2 + $0x168] sm:$0xff]  ;;  %v4856_v48 = vand.u32 4294901760, %v3750_v25  ;;  %v3809_v7 = vld [vmem:[%s4555_s2 + $0x160] sm:$0xff] }
 0x23c   : > { %v1426_v37 = vsub.f32 %v3721_v10, %v4851_v60  ;;  %4852 = vst [vmem:[#allocation65_spill] sm:$0xff] %v3776_v16  ;;  %v1432_v59 = vsub.f32 %v3738_v44, %v4853_v32  ;;  %v3788_v60 = vand.u32 4294901760, %v3755_v8  ;;  %v3804_v44 = vand.u32 4294901760, %v3767_v52 }
 0x23d   : > { %1410 = vmatprep.subr.mxu1 %v1409_v31  ;;  %4855 = vst [vmem:[#allocation67_spill] sm:$0xff] %v3792_v15  ;;  %v1438_v32 = vsub.f32 %v3750_v25, %v4856_v48  ;;  %v3818_v48 = vand.u32 4294901760, %v3781_v62 }
 0x23e   : > { %4854 = vst [vmem:[#allocation66_spill] sm:$0xff] %v3788_v60  ;;  %1416 = vmatpush2.msra.mxu1 %v1415_v5  ;;  %v1427_v31 = vand.u32 4294901760, %v1426_v37  ;;  %4857 = vst [vmem:[#allocation68_spill] sm:$0xff] %v3804_v44  ;;  %v1433_v17 = vand.u32 4294901760, %v1432_v59  ;;  %1163 = vmatpush2.msra.mxu0 %v3788_v60  ;;  %v3815_v37 = vsub.f32 %v3630_v6, %v3668_v55  ;;  %v4860_v59 = vand.u32 4294901760, %v3776_v16 }
 0x23f   : > { %1422 = vmatprep.subr.mxu1 %v1421_v38  ;;  %4859 = vst [vmem:[#allocation70_spill] sm:$0xff] %v3818_v48  ;;  %v1439_v25 = vand.u32 4294901760, %v1438_v32  ;;  %1165 = vmatprep.subr.mxu0 %v3804_v44  ;;  %v3831_v6 = vsub.f32 %v3644_v61, %v3682_v30  ;;  %v3834_v5 = vand.u32 4294901760, %v3797_v45  ;;  %v4863_v55 = vand.u32 4294901760, %v3792_v15  ;;  %v3851_v61 = vld [vmem:[%s4555_s2 + $0x150] sm:$0xff] }
 0x240   : > { %4858 = vst [vmem:[#allocation69_spill] sm:$0xff] %v3815_v37  ;;  %1428 = vmatpush2.msra.mxu1 %v1427_v31  ;;  %v1444_v38 = vsub.f32 %v3776_v16, %v4860_v59  ;;  %1167 = vmatpush2.msra.mxu0 %v3818_v48  ;;  %v3843_v32 = vsub.f32 %v3660_v47, %v3698_v4  ;;  %v3846_v59 = vand.u32 4294901760, %v3809_v7  ;;  %v3860_v47 = vand.u32 4294901760, %v3823_v11  ;;  %v3865_v4 = vld [vmem:[%s4555_s2 + $0x148] sm:$0xff]  ;;  %v3917_v16 = vld [vmem:[%s4555_s2 + $0x130] sm:$0xff] }
 0x241   : > { %4861 = vst [vmem:[#allocation71_spill] sm:$0xff] %v3831_v6  ;;  %4862 = vst [vmem:[#allocation72_spill] sm:$0xff] %v3834_v5  ;;  %1434 = vmatprep.subr.mxu1 %v1433_v17  ;;  %v1450_v10 = vsub.f32 %v3792_v15, %v4863_v55  ;;  %1169 = vmatprep.subr.mxu0 %v3834_v5  ;;  %v3857_v31 = vsub.f32 %v3673_v26, %v3710_v13  ;;  %v4870_v13 = vand.u32 4294901760, %v3831_v6 }
 0x242   : > { %4864 = vst [vmem:[#allocation73_spill] sm:$0xff] %v3843_v32  ;;  %4865 = vst [vmem:[#allocation74_spill] sm:$0xff] %v3846_v59  ;;  %1440 = vmatpush2.msra.mxu1 %v1439_v25  ;;  %v1445_v17 = vand.u32 4294901760, %v1444_v38  ;;  %v4868_v25 = vand.u32 4294901760, %v3815_v37  ;;  %v4696_v55 = vand.u32 4294901760, %v3843_v32  ;;  %1171 = vmatpush2.msra.mxu0 %v3846_v59  ;;  %v3874_v26 = vsub.f32 %v3687_v12, %v3724_v0  ;;  %v3891_v12 = vld [vmem:[%s4555_s2 + $0x140] sm:$0xff] }
 0x243   : > { %4866 = vst [vmem:[#allocation75_spill] sm:$0xff] %v3857_v31  ;;  %4867 = vst [vmem:[#allocation76_spill] sm:$0xff] %v3860_v47  ;;  %v1451_v30 = vand.u32 4294901760, %v1450_v10  ;;  %v1462_v15 = vsub.f32 %v3831_v6, %v4870_v13  ;;  %1173 = vmatprep.subr.mxu0 %v3860_v47  ;;  %v3882_v10 = vand.u32 4294901760, %v3851_v61  ;;  %v3898_v0 = vand.u32 4294901760, %v3865_v4 }
 0x244   : > { %v1456_v38 = vsub.f32 %v3815_v37, %v4868_v25  ;;  %4869 = vst [vmem:[#allocation77_spill] sm:$0xff] %v3874_v26  ;;  %1446 = vmatprep.subr.mxu1 %v1445_v17  ;;  %v3886_v25 = vsub.f32 %v3715_v50, %v3746_v54  ;;  %v1468_v13 = vsub.f32 %v3843_v32, %v4696_v55  ;;  %v3903_v50 = vld [vmem:[%s4555_s2 + $0x138] sm:$0xff]  ;;  %v4874_v6 = vand.u32 4294901760, %v3857_v31 }
 0x245   : > { %4871 = vst [vmem:[#allocation78_spill] sm:$0xff] %v3882_v10  ;;  %1452 = vmatpush2.msra.mxu1 %v1451_v30  ;;  %4873 = vst [vmem:[#allocation80_spill] sm:$0xff] %v3898_v0  ;;  %v1463_v54 = vand.u32 4294901760, %v1462_v15  ;;  %1175 = vmatpush2.msra.mxu0 %v3882_v10  ;;  %v3912_v55 = vsub.f32 %v3729_v18, %v3762_v51  ;;  %v4876_v15 = vand.u32 4294901760, %v3874_v26  ;;  %v3959_v51 = vld [vmem:[%s4555_s2 + $0x118] sm:$0xff] }
 0x246   : > { %4872 = vst [vmem:[#allocation79_spill] sm:$0xff] %v3886_v25  ;;  %v1457_v17 = vand.u32 4294901760, %v1456_v38  ;;  %v1474_v30 = vsub.f32 %v3857_v31, %v4874_v6  ;;  %v1469_v32 = vand.u32 4294901760, %v1468_v13  ;;  %1177 = vmatprep.subr.mxu0 %v3898_v0  ;;  %v3924_v6 = vand.u32 4294901760, %v3891_v12  ;;  %v3933_v38 = vld [vmem:[%s4555_s2 + $0x128] sm:$0xff] }
 0x247   : > { %4875 = vst [vmem:[#allocation81_spill] sm:$0xff] %v3912_v55  ;;  %v1480_v37 = vsub.f32 %v3874_v26, %v4876_v15  ;;  %v3928_v18 = vsub.f32 %v3755_v8, %v3788_v60  ;;  %v4879_v13 = vand.u32 4294901760, %v3886_v25  ;;  %v3940_v26 = vand.u32 4294901760, %v3903_v50  ;;  %v3945_v8 = vld [vmem:[%s4555_s2 + $0x120] sm:$0xff] }
 0x248   : > { %1458 = vmatprep.subr.mxu1 %v1457_v17  ;;  %4877 = vst [vmem:[#allocation82_spill] sm:$0xff] %v3924_v6  ;;  %v1475_v17 = vand.u32 4294901760, %v1474_v30  ;;  %1179 = vmatpush2.msra.mxu0 %v3924_v6  ;;  %v3951_v30 = vsub.f32 %v3767_v52, %v3804_v44  ;;  %v3967_v52 = vsub.f32 %v3781_v62, %v3818_v48  ;;  %v3987_v62 = vld [vmem:[%s4555_s2 + $0x110] sm:$0xff] }
 0x249   : > { %4878 = vst [vmem:[#allocation83_spill] sm:$0xff] %v3928_v18  ;;  %1464 = vmatpush2.msra.mxu1 %v1463_v54  ;;  %v1486_v15 = vsub.f32 %v3886_v25, %v4879_v13  ;;  %4880 = vst [vmem:[#allocation84_spill] sm:$0xff] %v3940_v26  ;;  %v1481_v60 = vand.u32 4294901760, %v1480_v37  ;;  %v3954_v13 = vand.u32 4294901760, %v3917_v16  ;;  %v4883_v37 = vand.u32 4294901760, %v3912_v55  ;;  %1181 = vmatprep.subr.mxu0 %v3940_v26 }
 0x24a   : > { %1470 = vmatprep.subr.mxu1 %v1469_v32  ;;  %4881 = vst [vmem:[#allocation85_spill] sm:$0xff] %v3951_v30  ;;  %4884 = vst [vmem:[#allocation87_spill] sm:$0xff] %v3967_v52  ;;  %v3970_v54 = vand.u32 4294901760, %v3933_v38  ;;  %v4886_v44 = vand.u32 4294901760, %v3928_v18 }
 0x24b   : > { %4882 = vst [vmem:[#allocation86_spill] sm:$0xff] %v3954_v13  ;;  %1476 = vmatpush2.msra.mxu1 %v1475_v17  ;;  %v1487_v25 = vand.u32 4294901760, %v1486_v15  ;;  %v1492_v32 = vsub.f32 %v3912_v55, %v4883_v37  ;;  %1183 = vmatpush2.msra.mxu0 %v3954_v13  ;;  %v3979_v15 = vsub.f32 %v3797_v45, %v3834_v5  ;;  %v3982_v37 = vand.u32 4294901760, %v3945_v8  ;;  %v4001_v5 = vld [vmem:[%s4555_s2 + $0x108] sm:$0xff] }
 0x24c   : > { %4885 = vst [vmem:[#allocation88_spill] sm:$0xff] %v3970_v54  ;;  %1482 = vmatprep.subr.mxu1 %v1481_v60  ;;  %v1498_v31 = vsub.f32 %v3928_v18, %v4886_v44  ;;  %1185 = vmatprep.subr.mxu0 %v3970_v54  ;;  %v3993_v17 = vsub.f32 %v3809_v7, %v3846_v59  ;;  %v3996_v45 = vand.u32 4294901760, %v3959_v51  ;;  %v4892_v59 = vand.u32 4294901760, %v3967_v52 }
 0x24d   : > { %4887 = vst [vmem:[#allocation89_spill] sm:$0xff] %v3979_v15  ;;  %1488 = vmatpush2.msra.mxu1 %v1487_v25  ;;  %v1493_v60 = vand.u32 4294901760, %v1492_v32  ;;  %v4890_v25 = vand.u32 4294901760, %v3951_v30  ;;  %v4731_v44 = vand.u32 4294901760, %v3979_v15  ;;  %1187 = vmatpush2.msra.mxu0 %v3982_v37  ;;  %v4010_v7 = vsub.f32 %v3823_v11, %v3860_v47  ;;  %v4027_v11 = vld [vmem:[%s4555_s2 + $0x100] sm:$0xff] }
 0x24e   : > { %4888 = vst [vmem:[#allocation90_spill] sm:$0xff] %v3993_v17  ;;  %4889 = vst [vmem:[#allocation91_spill] sm:$0xff] %v3996_v45  ;;  %v1499_v48 = vand.u32 4294901760, %v1498_v31  ;;  %v1510_v18 = vsub.f32 %v3967_v52, %v4892_v59  ;;  %1189 = vmatprep.subr.mxu0 %v3996_v45  ;;  %v4018_v31 = vand.u32 4294901760, %v3987_v62  ;;  %v4034_v47 = vand.u32 4294901760, %v4001_v5 }
 0x24f   : > { %v1504_v32 = vsub.f32 %v3951_v30, %v4890_v25  ;;  %4891 = vst [vmem:[#allocation92_spill] sm:$0xff] %v4010_v7  ;;  %1494 = vmatprep.subr.mxu1 %v1493_v60  ;;  %v4022_v25 = vsub.f32 %v3851_v61, %v3882_v10  ;;  %v1516_v59 = vsub.f32 %v3979_v15, %v4731_v44  ;;  %v978_v52 = vld [vmem:[#allocation2] sm:$0x3]  ;;  %v4895_v61 = vand.u32 4294901760, %v3993_v17  ;;  %v979_v44 = vld [vmem:[#allocation3] sm:$0x3] }
 0x250   : > { %4893 = vst [vmem:[#allocation93_spill] sm:$0xff] %v4018_v31  ;;  %1500 = vmatpush2.msra.mxu1 %v1499_v48  ;;  %4894 = vst [vmem:[#allocation94_spill] sm:$0xff] %v4034_v47  ;;  %v1511_v30 = vand.u32 4294901760, %v1510_v18  ;;  %1191 = vmatpush2.msra.mxu0 %v4018_v31  ;;  %v4896_v15 = vand.u32 4294901760, %v4010_v7  ;;  %v4050_v18 = vand.u32 4294901760, %v4027_v11 }
 0x251   : > { %v1505_v60 = vand.u32 4294901760, %v1504_v32  ;;  %v1522_v10 = vsub.f32 %v3993_v17, %v4895_v61  ;;  %v4043_v32 = vsub.f32 %v3865_v4, %v3898_v0  ;;  %v1517_v55 = vand.u32 4294901760, %v1516_v59  ;;  %1193 = vmatprep.subr.mxu0 %v4034_v47 }
 0x252   : > { %v1528_v2 = vsub.f32 %v4010_v7, %v4896_v15  ;;  %v4054_v61 = vsub.f32 %v3891_v12, %v3924_v6  ;;  %v4897_v4 = vand.u32 4294901760, %v4022_v25  ;;  %v984_v0 = vrot.slane %v978_v52, %v3085_v19  ;;  %1195 = vmatpush2.msra.mxu0 %v4050_v18 }
 0x253   : > { %1506 = vmatprep.subr.mxu1 %v1505_v60  ;;  %v1523_v48 = vand.u32 4294901760, %v1522_v10  ;;  %v4742_v59 = vand.u32 4294901760, %v4043_v32  ;;  %v988_v17 = vrot.slane %v978_v52, %v3087_v20  ;;  %v995_v12 = vrot.slane %v979_v44, %v3085_v19  ;;  %1608 = vmatprep.subr.mxu0 %v3127_v36 }
 0x254   : > { %1512 = vmatpush2.msra.mxu1 %v1511_v30  ;;  %v1534_v60 = vsub.f32 %v4022_v25, %v4897_v4  ;;  %v1529_v15 = vand.u32 4294901760, %v1528_v2  ;;  %v4745_v7 = vand.u32 4294901760, %v4054_v61  ;;  %v999_v4 = vrot.slane %v979_v44, %v3087_v20 }
 0x255   : > { %1518 = vmatprep.subr.mxu1 %v1517_v55  ;;  %v1540_v30 = vsub.f32 %v4043_v32, %v4742_v59  ;;  %v4071_v55 = vsub.f32 %v3903_v50, %v3940_v26  ;;  %v1002_v52 = vsel %vm225_vm1, %v984_v0, %v995_v12  ;;  %v4084_v44 = vsub.f32 %v3933_v38, %v3970_v54 }
 0x256   : > { %1524 = vmatpush2.msra.mxu1 %v1523_v48  ;;  %v1535_v10 = vand.u32 4294901760, %v1534_v60  ;;  %v1546_v2 = vsub.f32 %v4054_v61, %v4745_v7  ;;  %v4080_v48 = vsub.f32 %v3917_v16, %v3954_v13  ;;  %v1003_v60 = vsel %vm225_vm1, %v988_v17, %v999_v4 }
 0x257   : > { %1530 = vmatprep.subr.mxu1 %v1529_v15  ;;  %v1541_v50 = vand.u32 4294901760, %v1540_v30  ;;  %v4747_v15 = vand.u32 4294901760, %v4071_v55  ;;  %v4088_v59 = vand.u32 4294901760, %v1002_v52  ;;  %v4090_v7 = vand.u32 4294901760, %v1003_v60 }
 0x258   : > { %1536 = vmatpush2.msra.mxu1 %v1535_v10  ;;  %v1547_v20 = vand.u32 4294901760, %v1546_v2  ;;  %v4746_v0 = vand.u32 4294901760, %v4080_v48  ;;  %v4750_v16 = vand.u32 4294901760, %v4084_v44  ;;  %v4102_v17 = vsub.f32 %v3945_v8, %v3982_v37 }
 0x259   : > { %4898 = vst [vmem:[#allocation95_spill] sm:$0xff] %v4088_v59  ;;  %4899 = vst [vmem:[#allocation96_spill] sm:$0xff] %v4090_v7  ;;  %1542 = vmatprep.subr.mxu1 %v1541_v50  ;;  %v1552_v38 = vsub.f32 %v4071_v55, %v4747_v15  ;;  %v4098_v12 = vsub.f32 %v1002_v52, %v4088_v59  ;;  %v4106_v10 = vsub.f32 %v3959_v51, %v3996_v45 }
 0x25a   : > { %1548 = vmatpush2.msra.mxu1 %v1547_v20  ;;  %v4109_v30 = vsub.f32 %v1003_v60, %v4090_v7  ;;  %v1558_v4 = vsub.f32 %v4080_v48, %v4746_v0  ;;  %v1564_v2 = vsub.f32 %v4084_v44, %v4750_v16  ;;  %v4119_v8 = vsub.f32 %v3987_v62, %v4018_v31 }
 0x25b   : > { %v1553_v52 = vand.u32 4294901760, %v1552_v38  ;;  %v4752_v51 = vand.u32 4294901760, %v4098_v12  ;;  %v4751_v20 = vand.u32 4294901760, %v4102_v17  ;;  %v4753_v50 = vand.u32 4294901760, %v4106_v10  ;;  %1598 = vmatprep.mubr.f32.mxu1 %v4090_v7 }
 0x25c   : > { %v1559_v0 = vand.u32 4294901760, %v1558_v4  ;;  %v1565_v15 = vand.u32 4294901760, %v1564_v2  ;;  %v4764_v19 = vand.u32 4294901760, %v4119_v8  ;;  %v4138_v60 = vsub.f32 %v4001_v5, %v4034_v47 }
 0x25d   : > { %1554 = vmatprep.subr.mxu1 %v1553_v52  ;;  %v1205_v62 = vsub.f32 %v4098_v12, %v4752_v51  ;;  %v1570_v38 = vsub.f32 %v4102_v17, %v4751_v20  ;;  %v1576_v16 = vsub.f32 %v4106_v10, %v4753_v50  ;;  %v4900_v4 = vand.u32 4294901760, %v4109_v30 }
 0x25e   : > { %1560 = vmatpush2.msra.mxu1 %v1559_v0  ;;  %v1582_v52 = vsub.f32 %v4119_v8, %v4764_v19  ;;  %v4148_v20 = vsub.f32 %v4027_v11, %v4050_v18  ;;  %v4763_v5 = vand.u32 4294901760, %v4138_v60  ;;  %v4918_v19 = vld [vmem:[#allocation37_spill] sm:$0xff] }
 0x25f   : > { %v1199_v2 = vsub.f32 %v4109_v30, %v4900_v4  ;;  %v1206_v51 = vand.u32 4294901760, %v1205_v62  ;;  %1566 = vmatprep.subr.mxu1 %v1565_v15  ;;  %v1571_v50 = vand.u32 4294901760, %v1570_v38  ;;  %v1577_v7 = vand.u32 4294901760, %v1576_v16  ;;  %v4907_v62 = vld [vmem:[#allocation9_spill] sm:$0xff]  ;;  %v4908_v38 = vld [vmem:[#allocation27_spill] sm:$0xff]  ;;  %v4909_v4 = vld [vmem:[#allocation10_spill] sm:$0xff] }
 0x260   : > { %4901 = vst [vmem:[#allocation97_spill] sm:$0xff] %v4148_v20  ;;  %v1583_v31 = vand.u32 4294901760, %v1582_v52  ;;  %v4762_v45 = vand.u32 4294901760, %v4148_v20  ;;  %v1588_v0 = vsub.f32 %v4138_v60, %v4763_v5  ;;  %v4911_v52 = vld [vmem:[#allocation11_spill] sm:$0xff]  ;;  %v4917_v5 = vld [vmem:[#allocation14_spill] sm:$0xff] }
 0x261   : > { %v1200_v47 = vand.u32 4294901760, %v1199_v2  ;;  %1572 = vmatpush2.msra.mxu1 %v1571_v50  ;;  %v4906_v50 = vld [vmem:[#allocation25_spill] sm:$0xff] }
 0x262   : > { %1578 = vmatprep.subr.mxu1 %v1577_v7  ;;  %v1594_v11 = vsub.f32 %v4148_v20, %v4762_v45  ;;  %v1589_v15 = vand.u32 4294901760, %v1588_v0  ;;  %v4903_v7 = vld [vmem:[#allocation7_spill] sm:$0xff]  ;;  %v4910_v2 = vld [vmem:[#allocation29_spill] sm:$0xff] }
 0x263   : > { %1201 = vmatprep.mubr.f32.mxu0 %v1200_v47  ;;  %1584 = vmatpush2.msra.mxu1 %v1583_v31  ;;  %v4902_v47 = vld [vmem:[#allocation21_spill] sm:$0xff]  ;;  %v4904_v31 = vld [vmem:[#allocation23_spill] sm:$0xff] }
 0x264   : > { %1207 = vmatmul.mubr.f32.vlgmr.msra.gmra.mxu0 %v1206_v51  ;;  %v1595_v16 = vand.u32 4294901760, %v1594_v11  ;;  %1590 = vmatprep.subr.mxu1 %v1589_v15  ;;  %v4905_v51 = vld [vmem:[#allocation8_spill] sm:$0xff]  ;;  %v4912_v0 = vld [vmem:[#allocation31_spill] sm:$0xff]  ;;  %v4914_v15 = vld [vmem:[#allocation33_spill] sm:$0xff] }
 0x265   : > { %1611 = vmatpush1.msra.mxu0 %v3149_v41  ;;  %1800 = vmatprep.mubr.f32.mxu0 %v4109_v30  ;;  %v4913_v11 = vld [vmem:[#allocation12_spill] sm:$0xff]  ;;  %v4916_v45 = vld [vmem:[#allocation35_spill] sm:$0xff] }
 0x266   : > { %1614 = vmatprep.subr.mxu0 %v3155_v43  ;;  %1596 = vmatpush2.msra.mxu1 %v1595_v16  ;;  %v4915_v16 = vld [vmem:[#allocation13_spill] sm:$0xff] }
 0x267   : > { %1617 = vmatpush1.msra.mxu0 %v3178_v49  ;;  %1600 = vmatmul.mubr.f32.vlgmr.msra.gmra.mxu1 %v4088_v59  ;;  %v4919_v59 = vld [vmem:[#allocation15_spill] sm:$0xff] }
 0x268   : > { %1620 = vmatprep.subr.mxu0 %v3187_v53  ;;  %1810 = vmatprep.subr.mxu1 %v3089_v21 }
 0x269   : > { %1623 = vmatpush1.msra.mxu0 %v3203_v58  ;;  %1812 = vmatpush1.msra.mxu1 %v3091_v22 }
 0x26a   : > { %1626 = vmatprep.subr.mxu0 %v3217_v63  ;;  %1814 = vmatprep.subr.mxu1 %v3093_v23 }
 0x26b   : > { %1629 = vmatpush1.msra.mxu0 %v3252_v14  ;;  %1816 = vmatpush1.msra.mxu1 %v3104_v27 }
 0x26c   : > { %1632 = vmatprep.subr.mxu0 %v3267_v24  ;;  %1818 = vmatprep.subr.mxu1 %v3106_v28 }
 0x26d   : > { %1635 = vmatpush1.msra.mxu0 %v3281_v56  ;;  %1820 = vmatpush1.msra.mxu1 %v3108_v29 }
 0x26e   : > { %1638 = vmatprep.subr.mxu0 %v3295_v3  ;;  %1822 = vmatprep.subr.mxu1 %v3120_v33 }
 0x26f   : > { %1641 = vmatpush1.msra.mxu0 %v3307_v9  ;;  %1824 = vmatpush1.msra.mxu1 %v3122_v34 }
 0x270   : > { %1644 = vmatprep.subr.mxu0 %v3324_v39  ;;  %1826 = vmatprep.subr.mxu1 %v3124_v35 }
 0x271   : > { %1647 = vmatpush1.msra.mxu0 %v3336_v1  ;;  %1828 = vmatpush1.msra.mxu1 %v3146_v40 }
 0x272   : > { %1650 = vmatprep.subr.mxu0 %v3363_v57  ;;  %1830 = vmatprep.subr.mxu1 %v3152_v42 }
 0x273   : > { %1653 = vmatpush1.msra.mxu0 %v3379_v46  ;;  %1832 = vmatpush1.msra.mxu1 %v4903_v7 }
 0x274   : > { %1656 = vmatprep.subr.mxu0 %v4902_v47  ;;  %1834 = vmatprep.subr.mxu1 %v4905_v51 }
 0x275   : > { %1659 = vmatpush1.msra.mxu0 %v4904_v31  ;;  %1836 = vmatpush1.msra.mxu1 %v4907_v62  ;;  %v4921_v62 = vld [vmem:[#allocation16_spill] sm:$0xff] }
 0x276   : > { %1662 = vmatprep.subr.mxu0 %v4906_v50  ;;  %1838 = vmatprep.subr.mxu1 %v4909_v4  ;;  %v4920_v4 = vld [vmem:[#allocation39_spill] sm:$0xff] }
 0x277   : > { %1665 = vmatpush1.msra.mxu0 %v4908_v38  ;;  %1840 = vmatpush1.msra.mxu1 %v4911_v52  ;;  %v4922_v52 = vld [vmem:[#allocation41_spill] sm:$0xff] }
 0x278   : > { %1668 = vmatprep.subr.mxu0 %v4910_v2  ;;  %1842 = vmatprep.subr.mxu1 %v4913_v11  ;;  %v4924_v11 = vld [vmem:[#allocation43_spill] sm:$0xff] }
 0x279   : > { %1671 = vmatpush1.msra.mxu0 %v4912_v0  ;;  %1844 = vmatpush1.msra.mxu1 %v4915_v16  ;;  %v4923_v0 = vld [vmem:[#allocation17_spill] sm:$0xff] }
 0x27a   : > { %1674 = vmatprep.subr.mxu0 %v4914_v15  ;;  %1846 = vmatprep.subr.mxu1 %v4917_v5  ;;  %v4925_v15 = vld [vmem:[#allocation18_spill] sm:$0xff]  ;;  %v4926_v16 = vld [vmem:[#allocation45_spill] sm:$0xff]  ;;  %v4928_v5 = vld [vmem:[#allocation47_spill] sm:$0xff] }
 0x27b   : > { %1677 = vmatpush1.msra.mxu0 %v4916_v45  ;;  %1848 = vmatpush1.msra.mxu1 %v4919_v59  ;;  %v4927_v45 = vld [vmem:[#allocation19_spill] sm:$0xff]  ;;  %v4930_v59 = vld [vmem:[#allocation49_spill] sm:$0xff] }
 0x27c   : > { %1680 = vmatprep.subr.mxu0 %v4918_v19  ;;  %1850 = vmatprep.subr.mxu1 %v4921_v62  ;;  %v4929_v19 = vld [vmem:[#allocation20_spill] sm:$0xff]  ;;  %v4932_v62 = vld [vmem:[#allocation51_spill] sm:$0xff] }
 0x27d   : > { %1683 = vmatpush1.msra.mxu0 %v4920_v4  ;;  %1852 = vmatpush1.msra.mxu1 %v4923_v0  ;;  %v4931_v4 = vld [vmem:[#allocation22_spill] sm:$0xff]  ;;  %v4934_v0 = vld [vmem:[#allocation53_spill] sm:$0xff] }
 0x27e   : > { %1686 = vmatprep.subr.mxu0 %v4922_v52  ;;  %1854 = vmatprep.subr.mxu1 %v4925_v15  ;;  %v4933_v52 = vld [vmem:[#allocation24_spill] sm:$0xff]  ;;  %v4936_v15 = vld [vmem:[#allocation55_spill] sm:$0xff] }
 0x27f   : > { %1689 = vmatpush1.msra.mxu0 %v4924_v11  ;;  %1856 = vmatpush1.msra.mxu1 %v4927_v45  ;;  %v4935_v11 = vld [vmem:[#allocation26_spill] sm:$0xff]  ;;  %v4938_v45 = vld [vmem:[#allocation57_spill] sm:$0xff] }
 0x280   : > { %1692 = vmatprep.subr.mxu0 %v4926_v16  ;;  %1858 = vmatprep.subr.mxu1 %v4929_v19  ;;  %v4937_v16 = vld [vmem:[#allocation28_spill] sm:$0xff]  ;;  %v4940_v19 = vld [vmem:[#allocation59_spill] sm:$0xff] }
 0x281   : > { %1695 = vmatpush1.msra.mxu0 %v4928_v5  ;;  %1860 = vmatpush1.msra.mxu1 %v4931_v4  ;;  %v4939_v5 = vld [vmem:[#allocation30_spill] sm:$0xff]  ;;  %v4942_v4 = vld [vmem:[#allocation61_spill] sm:$0xff] }
 0x282   : > { %1698 = vmatprep.subr.mxu0 %v4930_v59  ;;  %1862 = vmatprep.subr.mxu1 %v4933_v52  ;;  %v4941_v59 = vld [vmem:[#allocation32_spill] sm:$0xff]  ;;  %v4944_v52 = vld [vmem:[#allocation63_spill] sm:$0xff] }
 0x283   : > { %1701 = vmatpush1.msra.mxu0 %v4932_v62  ;;  %1864 = vmatpush1.msra.mxu1 %v4935_v11  ;;  %v4943_v62 = vld [vmem:[#allocation34_spill] sm:$0xff]  ;;  %v4946_v11 = vld [vmem:[#allocation65_spill] sm:$0xff] }
 0x284   : > { %1704 = vmatprep.subr.mxu0 %v4934_v0  ;;  %1866 = vmatprep.subr.mxu1 %v4937_v16  ;;  %v4945_v0 = vld [vmem:[#allocation36_spill] sm:$0xff]  ;;  %v4948_v16 = vld [vmem:[#allocation67_spill] sm:$0xff] }
 0x285   : > { %1707 = vmatpush2.msra.mxu0 %v4936_v15  ;;  %1868 = vmatpush1.msra.mxu1 %v4939_v5  ;;  %v4947_v15 = vld [vmem:[#allocation38_spill] sm:$0xff]  ;;  %v4950_v5 = vld [vmem:[#allocation69_spill] sm:$0xff] }
 0x286   : > { %1710 = vmatprep.subr.mxu0 %v4938_v45  ;;  %1870 = vmatprep.subr.mxu1 %v4941_v59  ;;  %v4949_v45 = vld [vmem:[#allocation40_spill] sm:$0xff]  ;;  %v4952_v59 = vld [vmem:[#allocation71_spill] sm:$0xff] }
 0x287   : > { %1713 = vmatpush2.msra.mxu0 %v4940_v19  ;;  %1872 = vmatpush1.msra.mxu1 %v4943_v62  ;;  %v4951_v19 = vld [vmem:[#allocation42_spill] sm:$0xff]  ;;  %v4954_v62 = vld [vmem:[#allocation73_spill] sm:$0xff] }
 0x288   : > { %1716 = vmatprep.subr.mxu0 %v4942_v4  ;;  %1874 = vmatprep.subr.mxu1 %v4945_v0  ;;  %v4953_v4 = vld [vmem:[#allocation44_spill] sm:$0xff]  ;;  %v4956_v0 = vld [vmem:[#allocation75_spill] sm:$0xff] }
 0x289   : > { %1719 = vmatpush2.msra.mxu0 %v4944_v52  ;;  %1876 = vmatpush2.msra.mxu1 %v4947_v15  ;;  %v4955_v52 = vld [vmem:[#allocation46_spill] sm:$0xff]  ;;  %v4958_v15 = vld [vmem:[#allocation77_spill] sm:$0xff] }
 0x28a   : > { %1722 = vmatprep.subr.mxu0 %v4946_v11  ;;  %1878 = vmatprep.subr.mxu1 %v4949_v45  ;;  %v4957_v11 = vld [vmem:[#allocation48_spill] sm:$0xff]  ;;  %v4960_v45 = vld [vmem:[#allocation79_spill] sm:$0xff] }
 0x28b   : > { %1725 = vmatpush2.msra.mxu0 %v4948_v16  ;;  %1880 = vmatpush2.msra.mxu1 %v4951_v19  ;;  %v4959_v16 = vld [vmem:[#allocation50_spill] sm:$0xff]  ;;  %v4962_v19 = vld [vmem:[#allocation81_spill] sm:$0xff] }
 0x28c   : > { %1728 = vmatprep.subr.mxu0 %v4950_v5  ;;  %1882 = vmatprep.subr.mxu1 %v4953_v4  ;;  %v4961_v5 = vld [vmem:[#allocation52_spill] sm:$0xff]  ;;  %v4964_v4 = vld [vmem:[#allocation83_spill] sm:$0xff] }
 0x28d   : > { %1731 = vmatpush2.msra.mxu0 %v4952_v59  ;;  %1884 = vmatpush2.msra.mxu1 %v4955_v52  ;;  %v4963_v59 = vld [vmem:[#allocation54_spill] sm:$0xff]  ;;  %v4966_v52 = vld [vmem:[#allocation85_spill] sm:$0xff] }
 0x28e   : > { %1734 = vmatprep.subr.mxu0 %v4954_v62  ;;  %1886 = vmatprep.subr.mxu1 %v4957_v11  ;;  %v4965_v62 = vld [vmem:[#allocation56_spill] sm:$0xff]  ;;  %v4968_v11 = vld [vmem:[#allocation87_spill] sm:$0xff] }
 0x28f   : > { %1737 = vmatpush2.msra.mxu0 %v4956_v0  ;;  %1888 = vmatpush2.msra.mxu1 %v4959_v16  ;;  %v4967_v0 = vld [vmem:[#allocation58_spill] sm:$0xff]  ;;  %v4970_v16 = vld [vmem:[#allocation89_spill] sm:$0xff] }
 0x290   : > { %1740 = vmatprep.subr.mxu0 %v4958_v15  ;;  %1890 = vmatprep.subr.mxu1 %v4961_v5  ;;  %v4969_v15 = vld [vmem:[#allocation60_spill] sm:$0xff]  ;;  %v4972_v5 = vld [vmem:[#allocation90_spill] sm:$0xff] }
 0x291   : > { %1743 = vmatpush2.msra.mxu0 %v4960_v45  ;;  %1892 = vmatpush2.msra.mxu1 %v4963_v59  ;;  %v4971_v45 = vld [vmem:[#allocation62_spill] sm:$0xff]  ;;  %v4974_v59 = vld [vmem:[#allocation92_spill] sm:$0xff] }
 0x292   : > { %1746 = vmatprep.subr.mxu0 %v4962_v19  ;;  %1894 = vmatprep.subr.mxu1 %v4965_v62  ;;  %v4973_v19 = vld [vmem:[#allocation64_spill] sm:$0xff] }
 0x293   : > { %1749 = vmatpush2.msra.mxu0 %v4964_v4  ;;  %1896 = vmatpush2.msra.mxu1 %v4967_v0  ;;  %v4975_v4 = vld [vmem:[#allocation66_spill] sm:$0xff]  ;;  %v4976_v62 = vld [vmem:[#allocation68_spill] sm:$0xff] }
 0x294   : > { %1752 = vmatprep.subr.mxu0 %v4966_v52  ;;  %1898 = vmatprep.subr.mxu1 %v4969_v15  ;;  %v4977_v0 = vld [vmem:[#allocation70_spill] sm:$0xff]  ;;  %v4978_v15 = vld [vmem:[#allocation72_spill] sm:$0xff] }
 0x295   : > { %1755 = vmatpush2.msra.mxu0 %v4968_v11  ;;  %1900 = vmatpush2.msra.mxu1 %v4971_v45  ;;  %v4979_v45 = vld [vmem:[#allocation74_spill] sm:$0xff] }
 0x296   : > { %1758 = vmatprep.subr.mxu0 %v4970_v16  ;;  %1902 = vmatprep.subr.mxu1 %v4973_v19  ;;  %v4980_v19 = vld [vmem:[#allocation76_spill] sm:$0xff] }
 0x297   : > { %1761 = vmatpush2.msra.mxu0 %v4972_v5  ;;  %1904 = vmatpush2.msra.mxu1 %v4975_v4  ;;  %v4981_v4 = vld [vmem:[#allocation78_spill] sm:$0xff] }
 0x298   : > { %1764 = vmatprep.subr.mxu0 %v4974_v59  ;;  %1906 = vmatprep.subr.mxu1 %v4976_v62  ;;  %v4982_v62 = vld [vmem:[#allocation80_spill] sm:$0xff] }
 0x299   : > { %1767 = vmatpush2.msra.mxu0 %v4022_v25  ;;  %1908 = vmatpush2.msra.mxu1 %v4977_v0 }
 0x29a   : > { %1770 = vmatprep.subr.mxu0 %v4043_v32  ;;  %1910 = vmatprep.subr.mxu1 %v4978_v15 }
 0x29b   : > { %1773 = vmatpush2.msra.mxu0 %v4054_v61  ;;  %1912 = vmatpush2.msra.mxu1 %v4979_v45 }
 0x29c   : > { %1776 = vmatprep.subr.mxu0 %v4071_v55  ;;  %1914 = vmatprep.subr.mxu1 %v4980_v19 }
 0x29d   : > { %1779 = vmatpush2.msra.mxu0 %v4080_v48  ;;  %1916 = vmatpush2.msra.mxu1 %v4981_v4  ;;  %v4984_v4 = vand.u32 4294901760, %v3149_v41  ;;  %v4991_v41 = vand.u32 4294901760, %v3203_v58  ;;  %v4997_v58 = vand.u32 4294901760, %v3281_v56  ;;  %v5011_v56 = vld [vmem:[#allocation9_spill] sm:$0xff] }
 0x29e   : > { %1782 = vmatprep.subr.mxu0 %v4084_v44  ;;  %1918 = vmatprep.subr.mxu1 %v4982_v62  ;;  %v4983_v62 = vand.u32 4294901760, %v3127_v36  ;;  %v4990_v36 = vld [vmem:[#allocation94_spill] sm:$0xff] }
 0x29f   : > { %1785 = vmatpush2.msra.mxu0 %v4102_v17  ;;  %1920 = vmatpush2.msra.mxu1 %v3924_v6  ;;  %v4986_v6 = vld [vmem:[#allocation91_spill] sm:$0xff] }
 0x2a0   : > { %1788 = vmatprep.subr.mxu0 %v4106_v10  ;;  %1922 = vmatprep.subr.mxu1 %v3940_v26  ;;  %v4985_v26 = vand.u32 4294901760, %v3155_v43  ;;  %v4992_v43 = vand.u32 4294901760, %v3217_v63  ;;  %v4998_v63 = vand.u32 4294901760, %v3295_v3  ;;  %v5014_v3 = vld [vmem:[#allocation10_spill] sm:$0xff] }
 0x2a1   : > { %1791 = vmatpush2.msra.mxu0 %v4119_v8  ;;  %1924 = vmatpush2.msra.mxu1 %v3954_v13  ;;  %v4987_v13 = vand.u32 4294901760, %v3178_v49  ;;  %v4994_v49 = vand.u32 4294901760, %v3252_v14  ;;  %v4999_v14 = vand.u32 4294901760, %v3307_v9 }
 0x2a2   : > { %1794 = vmatprep.subr.mxu0 %v4138_v60  ;;  %1926 = vmatprep.subr.mxu1 %v3970_v54  ;;  %v4989_v54 = vand.u32 4294901760, %v3187_v53  ;;  %v4996_v53 = vand.u32 4294901760, %v3267_v24  ;;  %v5000_v24 = vand.u32 4294901760, %v3324_v39  ;;  %v5017_v39 = vld [vmem:[#allocation11_spill] sm:$0xff] }
 0x2a3   : > { %1797 = vmatpush2.msra.mxu0 %v4148_v20  ;;  %1928 = vmatpush2.msra.mxu1 %v3982_v37  ;;  %v4988_v20 = vld [vmem:[#allocation93_spill] sm:$0xff] }
 0x2a4   : > { %1803 = vmatmul.mubr.f32.vlgmr.msra.gmra.mxu0 %v4098_v12  ;;  %1953 = vmatprep.subr.mxu0 %v4983_v62  ;;  %v5027_v62 = vld [vmem:[#allocation43_spill] sm:$0xff] }
 0x2a5   : > { %1957 = vmatpush1.msra.mxu0 %v4984_v4  ;;  %1930 = vmatprep.subr.mxu1 %v4986_v6  ;;  %v5029_v4 = vld [vmem:[#allocation15_spill] sm:$0xff] }
 0x2a6   : > { %1961 = vmatprep.subr.mxu0 %v4985_v26  ;;  %1932 = vmatpush2.msra.mxu1 %v4988_v20  ;;  %v4993_v26 = vand.u32 4294901760, %v4109_v30  ;;  %v5021_v30 = vld [vmem:[#allocation39_spill] sm:$0xff] }
 0x2a7   : > { %1965 = vmatpush1.msra.mxu0 %v4987_v13  ;;  %1934 = vmatprep.subr.mxu1 %v4990_v36  ;;  %v4995_v13 = vand.u32 4294901760, %v4098_v12  ;;  %v5020_v12 = vld [vmem:[#allocation12_spill] sm:$0xff] }
 0x2a8   : > { %1969 = vmatprep.subr.mxu0 %v4989_v54  ;;  %1936 = vmatpush2.msra.mxu1 %v4050_v18 }
 0x2a9   : > { %1973 = vmatpush1.msra.mxu0 %v4991_v41  ;;  %1940 = vmatprep.mubr.f32.mxu1 %v4993_v26  ;;  %v5033_v26 = vld [vmem:[#allocation47_spill] sm:$0xff] }
 0x2aa   : > { %1977 = vmatprep.subr.mxu0 %v4992_v43  ;;  %1944 = vmatmul.mubr.f32.vlgmr.msra.gmra.mxu1 %v4995_v13  ;;  %v5032_v43 = vld [vmem:[#allocation16_spill] sm:$0xff]  ;;  %v5035_v13 = vld [vmem:[#allocation17_spill] sm:$0xff] }
 0x2ab   : > { %1981 = vmatpush1.msra.mxu0 %v4994_v49  ;;  %2216 = vmatprep.subr.mxu1 %v3089_v21  ;;  %v5001_v21 = vand.u32 4294901760, %v3336_v1  ;;  %v5034_v49 = vand.u32 4294901760, %v5033_v26 }
 0x2ac   : > { %1985 = vmatprep.subr.mxu0 %v4996_v53  ;;  %2218 = vmatpush1.msra.mxu1 %v3091_v22  ;;  %v5002_v22 = vand.u32 4294901760, %v3363_v57  ;;  %v5036_v53 = vld [vmem:[#allocation49_spill] sm:$0xff] }
 0x2ad   : > { %1989 = vmatpush1.msra.mxu0 %v4997_v58  ;;  %2220 = vmatprep.subr.mxu1 %v3093_v23  ;;  %v5003_v23 = vand.u32 4294901760, %v3379_v46  ;;  %v5018_v46 = vld [vmem:[#allocation37_spill] sm:$0xff]  ;;  %v5037_v58 = vand.u32 4294901760, %v5036_v53 }
 0x2ae   : > { %1993 = vmatprep.subr.mxu0 %v4998_v63  ;;  %2222 = vmatpush1.msra.mxu1 %v3104_v27  ;;  %v5004_v27 = vand.u32 4294901760, %v4902_v47  ;;  %v5019_v54 = vand.u32 4294901760, %v5018_v46  ;;  %v5022_v47 = vand.u32 4294901760, %v5021_v30  ;;  %v5038_v63 = vld [vmem:[#allocation18_spill] sm:$0xff] }
 0x2af   : > { %1997 = vmatpush1.msra.mxu0 %v4999_v14  ;;  %2224 = vmatprep.subr.mxu1 %v3106_v28  ;;  %v5005_v28 = vand.u32 4294901760, %v4904_v31  ;;  %v5024_v31 = vld [vmem:[#allocation41_spill] sm:$0xff]  ;;  %v5039_v14 = vld [vmem:[#allocation51_spill] sm:$0xff] }
 0x2b0   : > { %2001 = vmatprep.subr.mxu0 %v5000_v24  ;;  %2226 = vmatpush1.msra.mxu1 %v3108_v29  ;;  %v5006_v29 = vand.u32 4294901760, %v4906_v50  ;;  %v5026_v50 = vld [vmem:[#allocation14_spill] sm:$0xff]  ;;  %v5040_v24 = vand.u32 4294901760, %v5039_v14 }
 0x2b1   : > { %2005 = vmatpush1.msra.mxu0 %v5001_v21  ;;  %2228 = vmatprep.subr.mxu1 %v3120_v33  ;;  %v5007_v33 = vand.u32 4294901760, %v4908_v38  ;;  %v5028_v38 = vand.u32 4294901760, %v5027_v62  ;;  %v5041_v21 = vld [vmem:[#allocation19_spill] sm:$0xff] }
 0x2b2   : > { %2009 = vmatprep.subr.mxu0 %v5002_v22  ;;  %2230 = vmatpush1.msra.mxu1 %v3122_v34  ;;  %v5008_v34 = vand.u32 4294901760, %v4910_v2  ;;  %v5030_v2 = vld [vmem:[#allocation45_spill] sm:$0xff] }
 0x2b3   : > { %2013 = vmatpush1.msra.mxu0 %v5003_v23  ;;  %2232 = vmatprep.subr.mxu1 %v3124_v35  ;;  %v5009_v35 = vld [vmem:[#allocation31_spill] sm:$0xff]  ;;  %v5031_v41 = vand.u32 4294901760, %v5030_v2  ;;  %v5042_v22 = vld [vmem:[#allocation53_spill] sm:$0xff] }
 0x2b4   : > { %2017 = vmatprep.subr.mxu0 %v5004_v27  ;;  %2234 = vmatpush1.msra.mxu1 %v3146_v40  ;;  %v5010_v57 = vand.u32 4294901760, %v5009_v35  ;;  %v5012_v40 = vld [vmem:[#allocation33_spill] sm:$0xff]  ;;  %v5043_v23 = vand.u32 4294901760, %v5042_v22  ;;  %v5044_v27 = vld [vmem:[#allocation20_spill] sm:$0xff] }
 0x2b5   : > { %2021 = vmatpush1.msra.mxu0 %v5005_v28  ;;  %2236 = vmatprep.subr.mxu1 %v3152_v42  ;;  %v5013_v1 = vand.u32 4294901760, %v5012_v40  ;;  %v5015_v42 = vld [vmem:[#allocation35_spill] sm:$0xff] }
 0x2b6   : > { %2025 = vmatprep.subr.mxu0 %v5006_v29  ;;  %2238 = vmatpush1.msra.mxu1 %v4903_v7  ;;  %v5016_v9 = vand.u32 4294901760, %v5015_v42  ;;  %v5023_v7 = vld [vmem:[#allocation13_spill] sm:$0xff]  ;;  %v5045_v28 = vld [vmem:[#allocation55_spill] sm:$0xff] }
 0x2b7   : > { %2029 = vmatpush1.msra.mxu0 %v5007_v33  ;;  %2240 = vmatprep.subr.mxu1 %v4905_v51  ;;  %v5025_v51 = vand.u32 4294901760, %v5024_v31  ;;  %v5046_v29 = vand.u32 4294901760, %v5045_v28  ;;  %v5047_v33 = vld [vmem:[#allocation22_spill] sm:$0xff] }
 0x2b8   : > { %2033 = vmatprep.subr.mxu0 %v5008_v34  ;;  %2242 = vmatpush1.msra.mxu1 %v5011_v56  ;;  %v5048_v34 = vld [vmem:[#allocation57_spill] sm:$0xff]  ;;  %v5051_v56 = vld [vmem:[#allocation59_spill] sm:$0xff] }
 0x2b9   : > { %2037 = vmatpush1.msra.mxu0 %v5010_v57  ;;  %2244 = vmatprep.subr.mxu1 %v5014_v3  ;;  %v5049_v35 = vand.u32 4294901760, %v5048_v34  ;;  %v5050_v57 = vld [vmem:[#allocation24_spill] sm:$0xff]  ;;  %v5052_v40 = vand.u32 4294901760, %v5051_v56  ;;  %v5054_v3 = vld [vmem:[#allocation61_spill] sm:$0xff] }
 0x2ba   : > { %2041 = vmatprep.subr.mxu0 %v5013_v1  ;;  %2246 = vmatpush1.msra.mxu1 %v5017_v39  ;;  %v5053_v1 = vld [vmem:[#allocation26_spill] sm:$0xff]  ;;  %v5055_v42 = vand.u32 4294901760, %v5054_v3  ;;  %v5057_v39 = vld [vmem:[#allocation63_spill] sm:$0xff]  ;;  %v5091_v56 = vld [vmem:[#allocation52_spill] sm:$0xff]  ;;  %v5094_v3 = vand.u32 4294901760, %v4970_v16  ;;  %v5102_v16 = vand.u32 4294901760, %v4043_v32 }
 0x2bb   : > { %2045 = vmatpush1.msra.mxu0 %v5016_v9  ;;  %2248 = vmatprep.subr.mxu1 %v5020_v12  ;;  %v5056_v9 = vld [vmem:[#allocation28_spill] sm:$0xff]  ;;  %v5058_v46 = vand.u32 4294901760, %v5057_v39  ;;  %v5060_v12 = vld [vmem:[#allocation65_spill] sm:$0xff]  ;;  %v5097_v39 = vld [vmem:[#allocation58_spill] sm:$0xff]  ;;  %v5109_v32 = vand.u32 4294901760, %v4084_v44  ;;  %v5114_v44 = vand.u32 4294901760, %v4138_v60 }
 0x2bc   : > { %2049 = vmatprep.subr.mxu0 %v5019_v54  ;;  %2250 = vmatpush1.msra.mxu1 %v5023_v7  ;;  %v5059_v54 = vld [vmem:[#allocation30_spill] sm:$0xff]  ;;  %v5061_v30 = vand.u32 4294901760, %v5060_v12  ;;  %v5063_v7 = vld [vmem:[#allocation67_spill] sm:$0xff]  ;;  %v5103_v12 = vld [vmem:[#allocation64_spill] sm:$0xff] }
 0x2bd   : > { %2053 = vmatpush1.msra.mxu0 %v5022_v47  ;;  %2252 = vmatprep.subr.mxu1 %v5026_v50  ;;  %v5062_v47 = vld [vmem:[#allocation32_spill] sm:$0xff]  ;;  %v5064_v31 = vand.u32 4294901760, %v5063_v7  ;;  %v5066_v50 = vld [vmem:[#allocation69_spill] sm:$0xff]  ;;  %v5113_v7 = vld [vmem:[#allocation78_spill] sm:$0xff] }
 0x2be   : > { %2057 = vmatprep.subr.mxu0 %v5025_v51  ;;  %2254 = vmatpush1.msra.mxu1 %v5029_v4  ;;  %v5065_v51 = vld [vmem:[#allocation34_spill] sm:$0xff]  ;;  %v5067_v62 = vand.u32 4294901760, %v5066_v50  ;;  %v5069_v4 = vld [vmem:[#allocation71_spill] sm:$0xff] }
 0x2bf   : > { %2061 = vmatpush1.msra.mxu0 %v5028_v38  ;;  %2256 = vmatprep.subr.mxu1 %v5032_v43  ;;  %v5068_v38 = vld [vmem:[#allocation36_spill] sm:$0xff]  ;;  %v5070_v2 = vand.u32 4294901760, %v5069_v4  ;;  %v5072_v43 = vld [vmem:[#allocation73_spill] sm:$0xff] }
 0x2c0   : > { %2065 = vmatprep.subr.mxu0 %v5031_v41  ;;  %2258 = vmatpush1.msra.mxu1 %v5035_v13  ;;  %v5071_v41 = vld [vmem:[#allocation38_spill] sm:$0xff]  ;;  %v5073_v26 = vand.u32 4294901760, %v5072_v43  ;;  %v5075_v13 = vld [vmem:[#allocation75_spill] sm:$0xff] }
 0x2c1   : > { %2069 = vmatpush1.msra.mxu0 %v5034_v49  ;;  %2260 = vmatprep.subr.mxu1 %v5038_v63  ;;  %v5074_v49 = vld [vmem:[#allocation40_spill] sm:$0xff]  ;;  %v5076_v53 = vand.u32 4294901760, %v5075_v13  ;;  %v5078_v63 = vld [vmem:[#allocation77_spill] sm:$0xff] }
 0x2c2   : > { %2073 = vmatprep.subr.mxu0 %v5037_v58  ;;  %2262 = vmatpush1.msra.mxu1 %v5041_v21  ;;  %v5077_v58 = vld [vmem:[#allocation42_spill] sm:$0xff]  ;;  %v5079_v14 = vand.u32 4294901760, %v5078_v63  ;;  %v5081_v21 = vld [vmem:[#allocation79_spill] sm:$0xff] }
 0x2c3   : > { %2077 = vmatpush1.msra.mxu0 %v5040_v24  ;;  %2264 = vmatprep.subr.mxu1 %v5044_v27  ;;  %v5080_v24 = vld [vmem:[#allocation44_spill] sm:$0xff]  ;;  %v5082_v22 = vand.u32 4294901760, %v5081_v21  ;;  %v5084_v27 = vld [vmem:[#allocation81_spill] sm:$0xff] }
 0x2c4   : > { %2081 = vmatprep.subr.mxu0 %v5043_v23  ;;  %2266 = vmatpush1.msra.mxu1 %v5047_v33  ;;  %v5083_v23 = vld [vmem:[#allocation46_spill] sm:$0xff]  ;;  %v5085_v28 = vand.u32 4294901760, %v5084_v27  ;;  %v5087_v33 = vld [vmem:[#allocation83_spill] sm:$0xff] }
 0x2c5   : > { %2085 = vmatpush2.msra.mxu0 %v5046_v29  ;;  %2268 = vmatprep.subr.mxu1 %v5050_v57  ;;  %v5086_v29 = vld [vmem:[#allocation48_spill] sm:$0xff]  ;;  %v5088_v34 = vand.u32 4294901760, %v5087_v33  ;;  %v5090_v57 = vand.u32 4294901760, %v4966_v52  ;;  %v5098_v52 = vand.u32 4294901760, %v4974_v59  ;;  %v5106_v59 = vand.u32 4294901760, %v4071_v55 }
 0x2c6   : > { %2089 = vmatprep.subr.mxu0 %v5049_v35  ;;  %2270 = vmatpush1.msra.mxu1 %v5053_v1  ;;  %v5089_v35 = vld [vmem:[#allocation50_spill] sm:$0xff]  ;;  %v5111_v55 = vand.u32 4294901760, %v4106_v10  ;;  %v5120_v10 = vld [vmem:[#allocation95_spill] sm:$0xff] }
 0x2c7   : > { %2093 = vmatpush2.msra.mxu0 %v5052_v40  ;;  %2272 = vmatprep.subr.mxu1 %v5056_v9  ;;  %v5092_v40 = vand.u32 4294901760, %v4968_v11  ;;  %v5093_v1 = vld [vmem:[#allocation54_spill] sm:$0xff]  ;;  %v5096_v9 = vand.u32 4294901760, %v4972_v5  ;;  %v5100_v11 = vand.u32 4294901760, %v4022_v25  ;;  %v5104_v5 = vand.u32 4294901760, %v4054_v61 }
 0x2c8   : > { %2097 = vmatprep.subr.mxu0 %v5055_v42  ;;  %2274 = vmatpush1.msra.mxu1 %v5059_v54  ;;  %v5095_v42 = vld [vmem:[#allocation56_spill] sm:$0xff]  ;;  %v5101_v54 = vld [vmem:[#allocation62_spill] sm:$0xff]  ;;  %v5108_v25 = vand.u32 4294901760, %v4080_v48  ;;  %v5110_v61 = vand.u32 4294901760, %v4102_v17  ;;  %v5112_v48 = vand.u32 4294901760, %v4119_v8 }
 0x2c9   : > { %2101 = vmatpush2.msra.mxu0 %v5058_v46  ;;  %2276 = vmatprep.subr.mxu1 %v5062_v47  ;;  %v5099_v46 = vld [vmem:[#allocation60_spill] sm:$0xff]  ;;  %v5122_v8 = vld [vmem:[#allocation86_spill] sm:$0xff] }
 0x2ca   : > { %2105 = vmatprep.subr.mxu0 %v5061_v30  ;;  %2278 = vmatpush1.msra.mxu1 %v5065_v51  ;;  %v5105_v30 = vld [vmem:[#allocation66_spill] sm:$0xff]  ;;  %v5107_v47 = vld [vmem:[#allocation68_spill] sm:$0xff] }
 0x2cb   : > { %2109 = vmatpush2.msra.mxu0 %v5064_v31  ;;  %2280 = vmatprep.subr.mxu1 %v5068_v38  ;;  %v5118_v31 = vld [vmem:[#allocation96_spill] sm:$0xff] }
 0x2cc   : > { %2113 = vmatprep.subr.mxu0 %v5067_v62  ;;  %2282 = vmatpush2.msra.mxu1 %v5071_v41  ;;  %v5123_v51 = vld [vmem:[#allocation88_spill] sm:$0xff] }
 0x2cd   : > { %2117 = vmatpush2.msra.mxu0 %v5070_v2  ;;  %2284 = vmatprep.subr.mxu1 %v5074_v49 }
 0x2ce   : > { %2121 = vmatprep.subr.mxu0 %v5073_v26  ;;  %2286 = vmatpush2.msra.mxu1 %v5077_v58 }
 0x2cf   : > { %2125 = vmatpush2.msra.mxu0 %v5076_v53  ;;  %2288 = vmatprep.subr.mxu1 %v5080_v24 }
 0x2d0   : > { %2129 = vmatprep.subr.mxu0 %v5079_v14  ;;  %2290 = vmatpush2.msra.mxu1 %v5083_v23 }
 0x2d1   : > { %2133 = vmatpush2.msra.mxu0 %v5082_v22  ;;  %2292 = vmatprep.subr.mxu1 %v5086_v29 }
 0x2d2   : > { %2137 = vmatprep.subr.mxu0 %v5085_v28  ;;  %2294 = vmatpush2.msra.mxu1 %v5089_v35 }
 0x2d3   : > { %2141 = vmatpush2.msra.mxu0 %v5088_v34  ;;  %2296 = vmatprep.subr.mxu1 %v5091_v56 }
 0x2d4   : > { %2145 = vmatprep.subr.mxu0 %v5090_v57  ;;  %2298 = vmatpush2.msra.mxu1 %v5093_v1 }
 0x2d5   : > { %2149 = vmatpush2.msra.mxu0 %v5092_v40  ;;  %2300 = vmatprep.subr.mxu1 %v5095_v42  ;;  %v5124_v42 = vld [vmem:[#allocation4_spill] sm:$0xff] }
 0x2d6   : > { %2153 = vmatprep.subr.mxu0 %v5094_v3  ;;  %2302 = vmatpush2.msra.mxu1 %v5097_v39 }
 0x2d7   : > { %2157 = vmatpush2.msra.mxu0 %v5096_v9  ;;  %2304 = vmatprep.subr.mxu1 %v5099_v46 }
 0x2d8   : > { %2161 = vmatprep.subr.mxu0 %v5098_v52  ;;  %2306 = vmatpush2.msra.mxu1 %v5101_v54  ;;  %v2364_v52 = vld [vmem:[%s4556_s3] sm:$0x3]  ;;  %v5125_v54 = vld [vmem:[#allocation5_spill] sm:$0xff] }
 0x2d9   : > { %2165 = vmatpush2.msra.mxu0 %v5100_v11  ;;  %2308 = vmatprep.subr.mxu1 %v5103_v12  ;;  %v5126_v12 = vld [vmem:[#allocation6_spill] sm:$0xff] }
 0x2da   : > { %2169 = vmatprep.subr.mxu0 %v5102_v16  ;;  %2310 = vmatpush2.msra.mxu1 %v5105_v30 }
 0x2db   : > { %2173 = vmatpush2.msra.mxu0 %v5104_v5  ;;  %2312 = vmatprep.subr.mxu1 %v5107_v47 }
 0x2dc   : > { %2177 = vmatprep.subr.mxu0 %v5106_v59  ;;  %2314 = vmatpush2.msra.mxu1 %v4977_v0  ;;  %v5115_v0 = vld [vmem:[#allocation80_spill] sm:$0xff] }
 0x2dd   : > { %2181 = vmatpush2.msra.mxu0 %v5108_v25  ;;  %2316 = vmatprep.subr.mxu1 %v4978_v15  ;;  %v5116_v15 = vld [vmem:[#allocation97_spill] sm:$0xff] }
 0x2de   : > { %2185 = vmatprep.subr.mxu0 %v5109_v32  ;;  %2318 = vmatpush2.msra.mxu1 %v4979_v45  ;;  %v5117_v17 = vand.u32 4294901760, %v5116_v15  ;;  %v5119_v45 = vld [vmem:[#allocation82_spill] sm:$0xff]  ;;  %v2389_v32 = vld [vmem:[%s4557_s4] sm:$0x3] }
 0x2df   : > { %2189 = vmatpush2.msra.mxu0 %v5110_v61  ;;  %2320 = vmatprep.subr.mxu1 %v4980_v19  ;;  %v5121_v19 = vld [vmem:[#allocation84_spill] sm:$0xff] }
 0x2e0   : > { %2193 = vmatprep.subr.mxu0 %v5111_v55  ;;  %2322 = vmatpush2.msra.mxu1 %v5113_v7  ;;  %v2422_v55 = vld [vmem:[%s4558_s5] sm:$0xff]  ;;  %v2424_v7 = vld [vmem:[%s4558_s5 + $0x10] sm:$0xff] }
 0x2e1   : > { %2197 = vmatpush2.msra.mxu0 %v5112_v48  ;;  %2324 = vmatprep.subr.mxu1 %v5115_v0  ;;  %v2423_v48 = vld [vmem:[%s4558_s5 + $0x8] sm:$0xff]  ;;  %v2587_v0 = vld [vmem:[%s4558_s5 + $0x20] sm:$0xff] }
 0x2e2   : > { %2201 = vmatprep.subr.mxu0 %v5114_v44  ;;  %2207 = vmatprep.mubr.f32.mxu0 %v5118_v31  ;;  %v2425_v44 = vld [vmem:[%s4558_s5 + $0x18] sm:$0xff] }
 0x2e3   : > { %2205 = vmatpush2.msra.mxu0 %v5117_v17  ;;  %2326 = vmatpush2.msra.mxu1 %v5119_v45  ;;  %v2588_v17 = vld [vmem:[%s4558_s5 + $0x28] sm:$0xff]  ;;  %v2590_v45 = vld [vmem:[%s4558_s5 + $0x38] sm:$0xff] }
 0x2e4   : > { %2209 = vmatmul.mubr.f32.vlgmr.msra.gmra.mxu0 %v5120_v10  ;;  %2328 = vmatprep.subr.mxu1 %v5121_v19 }
 0x2e5   : > { %2344 = vmatprep.mubr.f32.mxu1 %v5118_v31  ;;  %2330 = vmatpush2.msra.mxu1 %v5122_v8  ;;  %v2589_v31 = vld [vmem:[%s4558_s5 + $0x30] sm:$0xff] }
 0x2e6   : > { %2332 = vmatprep.subr.mxu1 %v5123_v51 }
 0x2e7   : > { %2334 = vmatpush2.msra.mxu1 %v3982_v37 }
 0x2e8   : > { %2336 = vmatprep.subr.mxu1 %v4986_v6 }
 0x2e9   : > { %2338 = vmatpush2.msra.mxu1 %v4988_v20 }
 0x2ea   : > { %2340 = vmatprep.subr.mxu1 %v4990_v36 }
 0x2eb   : > { %2342 = vmatpush2.msra.mxu1 %v4050_v18 }
 0x2ec   : > { %2346 = vmatmul.mubr.f32.vlgmr.msra.gmra.mxu1 %v5120_v10 }
 0x324   : > { %v1208_v60 = vpop.f32.mrf.mxu0 }
 0x326   : > { %v1210_v50 = vpop.f32.mrf.mxu0 }
 0x327   : > { %v1601_v62 = vpop.f32.mrf.mxu1 }
 0x328   : > { %v1602_v43 = vadd.f32 %v1601_v62, %v1208_v60 }
 0x329   : > { %v1603_v4 = vpop.f32.mrf.mxu1 }
 0x32a   : > { %v1604_v37 = vadd.f32 %v1603_v4, %v1210_v50 }
 0x364   : > { %v1804_v38 = vpop.f32.mrf.mxu0 }
 0x365   : > { %v1805_v49 = vadd.f32 %v1804_v38, %v1602_v43 }
 0x366   : > { %v1806_v2 = vpop.f32.mrf.mxu0 }
 0x367   : > { %v1807_v13 = vadd.f32 %v1806_v2, %v1604_v37 }
 0x36a   : > { %v1945_v41 = vpop.f32.mrf.mxu1 }
 0x36b   : > { %v1946_v20 = vadd.f32 %v1945_v41, %v1805_v49 }
 0x36c   : > { %v1947_v6 = vpop.f32.mrf.mxu1 }
 0x36d   : > { %v1948_v36 = vadd.f32 %v1947_v6, %v1807_v13 }
 0x3a4   : > { %v2210_v26 = vpop.f32.mrf.mxu0 }
 0x3a5   : > { %v2211_v58 = vadd.f32 %v2210_v26, %v1946_v20 }
 0x3a6   : > { %v2212_v53 = vpop.f32.mrf.mxu0 }
 0x3a7   : > { %v2213_v63 = vadd.f32 %v2212_v53, %v1948_v36 }
 0x3ac   : > { %v2347_v18 = vpop.f32.mrf.mxu1 }
 0x3ad   : > { %v2348_v14 = vadd.f32 %v2347_v18, %v2211_v58 }
 0x3ae   : > { %v2349_v24 = vpop.f32.mrf.mxu1 }
 0x3af   : > { %v2352_v21 = vmul.f32 0.00048828125, %v2348_v14  ;;  %v2350_v22 = vadd.f32 %v2349_v24, %v2213_v63 }
 0x3b1   : > { %v2354_v23 = vmul.f32 %v2352_v21, %v2352_v21  ;;  %v2353_v27 = vmul.f32 0.00048828125, %v2350_v22 }
 0x3b3   : > { %v2358_v28 = vrot.slane %v2354_v23, 7  ;;  %v2355_v29 = vmul.f32 %v2353_v27, %v2353_v27 }
 0x3b5   : > { %v2362_v33 = vsub.f32 %v2352_v21, %v2358_v28  ;;  %v2359_v34 = vrot.slane %v2355_v29, 7 }
 0x3b7   : > { %v2365_v35 = vadd.f32 1e-05, %v2362_v33  ;;  %v2363_v57 = vsub.f32 %v2353_v27, %v2359_v34 }
 0x3b9   : > { %v2366_v56 = vadd.f32 1e-05, %v2363_v57  ;;  %2764 = vrsqrt.f32 %v2365_v35 }
 0x3bb   : > { %2766 = vrsqrt.f32 %v2366_v56 }
 0x3c6   : > { %v2765_v40 = vpop.eup %2764 }
 0x3c8   : > { %v2767_v1 = vpop.eup %2766 }
 0x3c9   : > { %v2371_v3 = vcombine.low %v2765_v40, %v2767_v1 }
 0x3cb   : > { %v2378_v9 = vrot.slane %v2371_v3, %v5124_v42 }
 0x3cd   : > { %v2379_v39 = vcombine.high %v2378_v9, %v2378_v9 }
 0x3cf   : > { %v2386_v46 = vrot.slane %v2379_v39, %v5124_v42 }
 0x3d1   : > { %v2388_v11 = vmul.f32 %v2386_v46, %v2364_v52 }
 0x3d3   : > { %v2394_v16 = vrot.slane %v2388_v11, %v5125_v54  ;;  %v2398_v5 = vrot.slane %v2388_v11, %v5126_v12 }
 0x3d5   : > { %v2401_v30 = vmul.f32 %v2394_v16, %v2352_v21  ;;  %v2402_v59 = vmul.f32 %v2398_v5, %v2353_v27  ;;  %v2426_v10 = vmul.f32 %v2422_v55, %v2394_v16  ;;  %v2427_v19 = vmul.f32 %v2423_v48, %v2398_v5 }
 0x3d6   : > { %v2428_v8 = vmul.f32 %v2424_v7, %v2394_v16  ;;  %v2429_v51 = vmul.f32 %v2425_v44, %v2398_v5  ;;  %v2458_v62 = vmul.f32 %v2587_v0, %v2394_v16  ;;  %v2459_v38 = vmul.f32 %v2588_v17, %v2398_v5 }
 0x3d7   : > { %v2405_v47 = vcombine.low %v2401_v30, %v2402_v59  ;;  %v2460_v4 = vmul.f32 %v2589_v31, %v2394_v16  ;;  %v2461_v2 = vmul.f32 %v2590_v45, %v2398_v5 }
 0x3d9   : > { %v2412_v25 = vrot.slane %v2405_v47, %v5124_v42 }
 0x3db   : > { %v2419_v61 = vrot.slane %v2412_v25, %v5124_v42 }
 0x3dd   : > { %v2421_v15 = vsub.f32 %v2389_v32, %v2419_v61 }
 0x3df   : > { %v2434_v60 = vrot.slane %v2421_v15, %v5125_v54  ;;  %v2438_v50 = vrot.slane %v2421_v15, %v5126_v12 }
 0x3e1   : > { %v2441_v41 = vadd.f32 %v2434_v60, %v2426_v10  ;;  %v2442_v43 = vadd.f32 %v2438_v50, %v2427_v19  ;;  %v2443_v26 = vadd.f32 %v2434_v60, %v2428_v8  ;;  %v2444_v37 = vadd.f32 %v2438_v50, %v2429_v51 }
 0x3e2   : > { %v2462_v49 = vadd.f32 %v2458_v62, %v2434_v60  ;;  %v2463_v6 = vadd.f32 %v2459_v38, %v2438_v50  ;;  %v2464_v13 = vadd.f32 %v2460_v4, %v2434_v60  ;;  %v2465_v20 = vadd.f32 %v2461_v2, %v2438_v50 }
 0x3e3   : > { %v2445_v53 = vmax.f32 %v2441_v41, 0.0  ;;  %v2446_v36 = vmax.f32 %v2442_v43, 0.0  ;;  %v2447_v58 = vmax.f32 %v2443_v26, 0.0  ;;  %v2448_v18 = vmax.f32 %v2444_v37, 0.0 }
 0x3e4   : > { %v2466_v63 = vmax.f32 %v2462_v49, 0.0  ;;  %v2467_v14 = vmax.f32 %v2463_v6, 0.0  ;;  %v2468_v24 = vmax.f32 %v2464_v13, 0.0  ;;  %v2469_v21 = vmax.f32 %v2465_v20, 0.0 }
 0x3e5   : > { %2449 = vst [vmem:[%s4558_s5] sm:$0xff] %v2445_v53  ;;  %2450 = vst [vmem:[%s4558_s5 + $0x8] sm:$0xff] %v2446_v36 }
 0x3e6   : > { %2451 = vst [vmem:[%s4558_s5 + $0x10] sm:$0xff] %v2447_v58  ;;  %2452 = vst [vmem:[%s4558_s5 + $0x18] sm:$0xff] %v2448_v18 }
 0x3e7   : > { %2591 = vst [vmem:[%s4558_s5 + $0x20] sm:$0xff] %v2466_v63  ;;  %2592 = vst [vmem:[%s4558_s5 + $0x28] sm:$0xff] %v2467_v14 }
 0x3e8   : > { %2593 = vst [vmem:[%s4558_s5 + $0x30] sm:$0xff] %v2468_v24  ;;  %2594 = vst [vmem:[%s4558_s5 + $0x38] sm:$0xff] %v2469_v21 }
 0x3e9 PF: > { %s15_s18 = sadd.s32 1, %s2774_s18  }
 0x3ea   : > { %p12_p6 = scmp.ge.s32.totalorder %s15_s18, 4  }
 0x3ec   :  { %14 = sbr.rel (!%p12_p6) target bundleno = 1 (0x1), region = 76 }

</bundles_post_ra>
